<compile_context>
chip_gen: v7x
topology: tpu7x:2x2x1
jax: 0.10.0
libtpu: 0.0.40
codegen_flags: <defaults>
</compile_context>

<pallas_src>
import numpy as np
import jax
import jax.numpy as jnp
from jax import lax
from jax.experimental import pallas as pl
from jax.experimental.pallas import tpu as pltpu

_EPS = 1e-5
_GROUPS = 4


def _silu(x):
    return x * jax.nn.sigmoid(x)


def _stem_kernel(x_ref, w1_ref, w2_ref, s1_ref, b1_ref, s2_ref, b2_ref,
                 bp_ref, o_ref, y1_scr):
    bblk, hp, wp, c4 = x_ref.shape            # (Bblk, h1+1, w1+1, 4*Cin) space-to-depth phases
    cin = c4 // 4
    cout = s1_ref.shape[-1]
    h1, w1 = hp - 1, wp - 1                   # conv1 output spatial size
    m = bblk * h1 * w1

    # ---- conv1: 3x3 / stride 2 as a single im2col matmul --------------------------------
    # the wrapper already did pad + stride-2 space-to-depth, so every tap is a stride-1
    # window of the phase tensor; 4 window slices + one lane concat build the im2col slab.
    xv = x_ref[...]
    pieces = []
    for qy in range(2):
        for qx in range(2):
            pieces.append(xv[:, qy:qy + h1, qx:qx + w1, :])          # (Bblk, h1, w1, 4*Cin)
    g1 = jnp.concatenate(pieces, axis=-1).reshape(m, 16 * cin)
    acc1 = jnp.dot(g1.astype(jnp.bfloat16), w1_ref[...],
                   preferred_element_type=jnp.float32)               # (m, Cout) f32
    # BN1 (inference, folded) + SiLU in f32
    y1 = _silu(acc1 * s1_ref[...] + b1_ref[...])

    # ---- conv2: 3x3 / stride 1 / groups=4 (block-diagonal dense) as one im2col matmul ---
    # stage y1 in a zero-bordered VMEM scratch; the 9 taps become stride-1 slices.
    y1_scr[...] = jnp.zeros_like(y1_scr)
    y1_scr[:, 1:1 + h1, 1:1 + w1, :] = y1.reshape(bblk, h1, w1, cout)
    yv = y1_scr[...]
    pieces2 = []
    for dy in range(3):
        for dx in range(3):
            pieces2.append(yv[:, dy:dy + h1, dx:dx + w1, :])         # (Bblk, h1, w1, Cout)
    g2 = jnp.concatenate(pieces2, axis=-1).reshape(m, 9 * cout)      # K = 288
    acc2 = jnp.dot(g2.astype(jnp.bfloat16), w2_ref[...],
                   preferred_element_type=jnp.float32)               # (m, Cout) f32
    # BN2 (inference, folded) + SiLU in f32
    z = _silu(acc2 * s2_ref[...] + b2_ref[...])

    # ---- AvgPool 3x3 / stride 2 / pad 1 (count_include_pad) as a pooling matmul ---------
    pooled = jnp.dot(bp_ref[...], z, preferred_element_type=jnp.float32) * (1.0 / 9.0)
    o_ref[0] = pooled.astype(o_ref.dtype)                            # (Bblk*ho*wo, Cout)


def _pick_bblk(b, m_per_img):
    """Largest divisor of b keeping the matmul M dimension <= 1024 rows per grid step."""
    best = 1
    for d in range(1, b + 1):
        if b % d == 0 and d * m_per_img <= 1024:
            best = d
    return best


def darwin_stem_in(x_nchw, params):
    """Forward pass of DarwinStemIN. Input NCHW, output NCHW."""
    (w1, g1, be1, m1, v1, w2, g2, be2, m2, v2) = params
    b, cin, h, w = x_nchw.shape
    assert h % 4 == 0 and w % 4 == 0, "spatial dims must be divisible by 4"
    cout = w1.shape[0]
    cg = cout // _GROUPS
    h1, w1o = h // 2, w // 2                  # conv1 output
    ho, wo = h1 // 2, w1o // 2                # pool output

    bblk = _pick_bblk(b, h1 * w1o)
    nb = b // bblk

    # ---- input: NCHW -> NHWC, pad 1, stride-2 space-to-depth (pure layout, done by XLA) --
    x_nhwc = jnp.transpose(x_nchw, (0, 2, 3, 1)).astype(jnp.float32)
    x_pad = jnp.pad(x_nhwc, ((0, 0), (1, 1), (1, 1), (0, 0)))                  # (B, H+2, W+2, Cin)
    x_s2d = x_pad.reshape(b, h1 + 1, 2, w1o + 1, 2, cin)
    x_s2d = jnp.transpose(x_s2d, (0, 1, 3, 2, 4, 5)).reshape(b, h1 + 1, w1o + 1, 4 * cin)

    # ---- conv1 weight: OIHW -> space-to-depth im2col layout (16*Cin, Cout), bf16 ---------
    w1_t = jnp.transpose(w1, (2, 3, 1, 0))                                     # (ky, kx, Cin, Cout)
    w1_sd = jnp.zeros((2, 2, 2, 2, cin, cout), jnp.float32)                    # [qy, qx, ry, rx, c, o]
    for dy in range(3):
        qy, ry = divmod(dy, 2)
        for dx in range(3):
            qx, rx = divmod(dx, 2)
            w1_sd = w1_sd.at[qy, qx, ry, rx].set(w1_t[dy, dx])
    w1_mat = w1_sd.reshape(16 * cin, cout).astype(jnp.bfloat16)

    # ---- conv2 (grouped) weight: block-diagonal dense (9*Cout, Cout), bf16 ---------------
    w2_taps = jnp.zeros((9, cout, cout), jnp.float32)
    for g in range(_GROUPS):
        blk = w2[g * cg:(g + 1) * cg]                                  # (cg, cg, 3, 3) [o, i, ky, kx]
        blk = jnp.transpose(blk, (2, 3, 1, 0)).reshape(9, cg, cg)      # (tap, i, o)
        w2_taps = w2_taps.at[:, g * cg:(g + 1) * cg, g * cg:(g + 1) * cg].set(blk)
    w2_mat = w2_taps.reshape(9 * cout, cout).astype(jnp.bfloat16)

    # ---- fold BatchNorm (inference mode) into per-channel scale/bias (f32) ---------------
    s1 = (g1 / jnp.sqrt(v1 + _EPS)).reshape(1, cout).astype(jnp.float32)
    b1f = (be1 - m1 * g1 / jnp.sqrt(v1 + _EPS)).reshape(1, cout).astype(jnp.float32)
    s2 = (g2 / jnp.sqrt(v2 + _EPS)).reshape(1, cout).astype(jnp.float32)
    b2f = (be2 - m2 * g2 / jnp.sqrt(v2 + _EPS)).reshape(1, cout).astype(jnp.float32)

    # ---- AvgPool as a constant block-diagonal (over batch-block) pooling matrix ----------
    bp = np.zeros((bblk * ho * wo, bblk * h1 * w1o), np.float32)
    for bb in range(bblk):
        for i in range(ho):
            for j in range(wo):
                prow = bb * ho * wo + i * wo + j
                for dy in range(3):
                    for dx in range(3):
                        a = 2 * i + dy - 1
                        c = 2 * j + dx - 1
                        if 0 <= a < h1 and 0 <= c < w1o:
                            bp[prow, bb * h1 * w1o + a * w1o + c] = 1.0
    bp = jnp.asarray(bp)

    out = pl.pallas_call(
        _stem_kernel,
        out_shape=jax.ShapeDtypeStruct((nb, bblk * ho * wo, cout), jnp.float32),
        grid_spec=pltpu.PrefetchScalarGridSpec(
            num_scalar_prefetch=0,
            grid=(nb,),
            in_specs=[
                pl.BlockSpec((bblk, h1 + 1, w1o + 1, 4 * cin), lambda i: (i, 0, 0, 0)),
                pl.BlockSpec((16 * cin, cout), lambda i: (0, 0)),
                pl.BlockSpec((9 * cout, cout), lambda i: (0, 0)),
                pl.BlockSpec((1, cout), lambda i: (0, 0)),
                pl.BlockSpec((1, cout), lambda i: (0, 0)),
                pl.BlockSpec((1, cout), lambda i: (0, 0)),
                pl.BlockSpec((1, cout), lambda i: (0, 0)),
                pl.BlockSpec((bblk * ho * wo, bblk * h1 * w1o), lambda i: (0, 0)),
            ],
            out_specs=pl.BlockSpec((1, bblk * ho * wo, cout), lambda i: (i, 0, 0)),
            scratch_shapes=[pltpu.VMEM((bblk, h1 + 2, w1o + 2, cout), jnp.float32)],
        ),
        compiler_params=pltpu.CompilerParams(dimension_semantics=("parallel",)),
    )(x_s2d, w1_mat, w2_mat, s1, b1f, s2, b2f, bp)

    out = out.reshape(b, ho, wo, cout)                 # (B, ho, wo, Cout) NHWC
    return jnp.transpose(out, (0, 3, 1, 2))            # back to NCHW


def _reference(x_nchw, params):
    """Pure-JAX (XLA) reference of the same forward pass, in NCHW."""
    (w1, g1, be1, m1, v1, w2, g2, be2, m2, v2) = params

    def bn(y, g, be, m, v):
        sh = (1, -1, 1, 1)
        return ((y - m.reshape(sh)) / jnp.sqrt(v.reshape(sh) + _EPS)
                * g.reshape(sh) + be.reshape(sh))

    y = lax.conv_general_dilated(x_nchw, w1, (2, 2), ((1, 1), (1, 1)),
                                 dimension_numbers=("NCHW", "OIHW", "NCHW"))
    y = bn(y, g1, be1, m1, v1)
    y = y * jax.nn.sigmoid(y)
    y = lax.conv_general_dilated(y, w2, (1, 1), ((1, 1), (1, 1)),
                                 dimension_numbers=("NCHW", "OIHW", "NCHW"),
                                 feature_group_count=_GROUPS)
    y = bn(y, g2, be2, m2, v2)
    y = y * jax.nn.sigmoid(y)
    s = lax.reduce_window(y, 0.0, lax.add, (1, 1, 3, 3), (1, 1, 2, 2),
                          ((0, 0), (0, 0), (1, 1), (1, 1)))
    return s / 9.0


if __name__ == "__main__":
    key = jax.random.PRNGKey(0)
    ks = jax.random.split(key, 12)

    B, CIN, H, W = 2, 4, 16, 16     # small input consistent with the module
    COUT = 32                       # w_out must be divisible by groups=4

    x = jax.random.normal(ks[0], (B, CIN, H, W), jnp.float32)
    w1 = 0.2 * jax.random.normal(ks[1], (COUT, CIN, 3, 3), jnp.float32)
    g1 = 1.0 + 0.1 * jax.random.normal(ks[2], (COUT,), jnp.float32)
    be1 = 0.1 * jax.random.normal(ks[3], (COUT,), jnp.float32)
    m1 = 0.05 * jax.random.normal(ks[4], (COUT,), jnp.float32)
    v1 = jax.random.uniform(ks[5], (COUT,), jnp.float32, 0.5, 1.5)
    w2 = 0.2 * jax.random.normal(ks[6], (COUT, COUT // _GROUPS, 3, 3), jnp.float32)
    g2 = 1.0 + 0.1 * jax.random.normal(ks[7], (COUT,), jnp.float32)
    be2 = 0.1 * jax.random.normal(ks[8], (COUT,), jnp.float32)
    m2 = 0.05 * jax.random.normal(ks[9], (COUT,), jnp.float32)
    v2 = jax.random.uniform(ks[10], (COUT,), jnp.float32, 0.5, 1.5)
    params = (w1, g1, be1, m1, v1, w2, g2, be2, m2, v2)

    out = jax.block_until_ready(darwin_stem_in(x, params))
    ref = jax.block_until_ready(_reference(x, params))

    assert out.shape == (B, COUT, H // 4, W // 4), out.shape
    max_err = float(jnp.max(jnp.abs(out - ref)))
    assert jnp.allclose(out, ref, rtol=2e-2, atol=2e-2), max_err
    print("KERNEL_OK")
</pallas_src>

<mosaic_0001>
module attributes {stable_mosaic.version = 11 : i64} {
  func.func @_stem_kernel(%arg0: i32, %arg1: memref<2x9x9x16xf32, #tpu.memory_space<vmem>>, %arg2: memref<64x32xbf16, #tpu.memory_space<vmem>>, %arg3: memref<288x32xbf16, #tpu.memory_space<vmem>>, %arg4: memref<1x32xf32, #tpu.memory_space<vmem>>, %arg5: memref<1x32xf32, #tpu.memory_space<vmem>>, %arg6: memref<1x32xf32, #tpu.memory_space<vmem>>, %arg7: memref<1x32xf32, #tpu.memory_space<vmem>>, %arg8: memref<32x128xf32, #tpu.memory_space<vmem>>, %arg9: memref<1x32x32xf32, #tpu.memory_space<vmem>>, %arg10: memref<2x10x10x32xf32, #tpu.memory_space<vmem>>) attributes {dimension_semantics = [#tpu.dimension_semantics<parallel>], iteration_bounds = array<i64: 1>, scalar_prefetch = 0 : i64, scratch_operands = 1 : i64, tpu.core_type = #tpu.core_type<tc>, window_params = [{transform_indices = @transform_0, window_bounds = array<i64: 2, 9, 9, 16>}, {pipeline_mode = #tpu.pipeline_mode<synchronous>, transform_indices = @transform_1, window_bounds = array<i64: 64, 32>}, {pipeline_mode = #tpu.pipeline_mode<synchronous>, transform_indices = @transform_2, window_bounds = array<i64: 288, 32>}, {pipeline_mode = #tpu.pipeline_mode<synchronous>, transform_indices = @transform_3, window_bounds = array<i64: 1, 32>}, {pipeline_mode = #tpu.pipeline_mode<synchronous>, transform_indices = @transform_4, window_bounds = array<i64: 1, 32>}, {pipeline_mode = #tpu.pipeline_mode<synchronous>, transform_indices = @transform_5, window_bounds = array<i64: 1, 32>}, {pipeline_mode = #tpu.pipeline_mode<synchronous>, transform_indices = @transform_6, window_bounds = array<i64: 1, 32>}, {pipeline_mode = #tpu.pipeline_mode<synchronous>, transform_indices = @transform_7, window_bounds = array<i64: 32, 128>}, {transform_indices = @transform_8, window_bounds = array<i64: 1, 32, 32>}]} {
    %c0 = arith.constant 0 : index
    %c0_0 = arith.constant 0 : index
    %c0_1 = arith.constant 0 : index
    %c0_2 = arith.constant 0 : index
    %0 = vector.load %arg1[%c0, %c0_0, %c0_1, %c0_2] : memref<2x9x9x16xf32, #tpu.memory_space<vmem>>, vector<2x9x9x16xf32>
    %1 = vector.extract_strided_slice %0 {offsets = [0, 0, 0, 0], sizes = [2, 8, 8, 16], strides = [1, 1, 1, 1]} : vector<2x9x9x16xf32> to vector<2x8x8x16xf32>
    %2 = vector.extract_strided_slice %0 {offsets = [0, 0, 1, 0], sizes = [2, 8, 8, 16], strides = [1, 1, 1, 1]} : vector<2x9x9x16xf32> to vector<2x8x8x16xf32>
    %3 = vector.extract_strided_slice %0 {offsets = [0, 1, 0, 0], sizes = [2, 8, 8, 16], strides = [1, 1, 1, 1]} : vector<2x9x9x16xf32> to vector<2x8x8x16xf32>
    %4 = vector.extract_strided_slice %0 {offsets = [0, 1, 1, 0], sizes = [2, 8, 8, 16], strides = [1, 1, 1, 1]} : vector<2x9x9x16xf32> to vector<2x8x8x16xf32>
    %5 = tpu.concatenate %1, %2, %3, %4 in 3 : vector<2x8x8x16xf32>, vector<2x8x8x16xf32>, vector<2x8x8x16xf32>, vector<2x8x8x16xf32> -> vector<2x8x8x64xf32>
    %6 = vector.shape_cast %5 : vector<2x8x8x64xf32> to vector<128x64xf32>
    %7 = arith.truncf %6 : vector<128x64xf32> to vector<128x64xbf16>
    %c0_3 = arith.constant 0 : index
    %c0_4 = arith.constant 0 : index
    %8 = vector.load %arg2[%c0_3, %c0_4] : memref<64x32xbf16, #tpu.memory_space<vmem>>, vector<64x32xbf16>
    %cst = arith.constant dense<0.000000e+00> : vector<128x32xf32>
    %9 = tpu.matmul %7, %8, %cst {dimension_numbers = #tpu.dot_dimension_numbers<[1], [0], [0], [1], [0, 0, 1, 1], [], []>} : vector<128x64xbf16>, vector<64x32xbf16>, vector<128x32xf32> -> vector<128x32xf32>
    %c0_5 = arith.constant 0 : index
    %c0_6 = arith.constant 0 : index
    %10 = vector.load %arg4[%c0_5, %c0_6] : memref<1x32xf32, #tpu.memory_space<vmem>>, vector<1x32xf32>
    %11 = vector.broadcast %10 : vector<1x32xf32> to vector<128x32xf32>
    %12 = arith.mulf %9, %11 : vector<128x32xf32>
    %c0_7 = arith.constant 0 : index
    %c0_8 = arith.constant 0 : index
    %13 = vector.load %arg5[%c0_7, %c0_8] : memref<1x32xf32, #tpu.memory_space<vmem>>, vector<1x32xf32>
    %14 = vector.broadcast %13 : vector<1x32xf32> to vector<128x32xf32>
    %15 = arith.addf %12, %14 : vector<128x32xf32>
    %16 = arith.negf %15 : vector<128x32xf32>
    %17 = math.exp %16 : vector<128x32xf32>
    %cst_9 = arith.constant 1.000000e+00 : f32
    %18 = vector.broadcast %cst_9 : f32 to vector<128x32xf32>
    %19 = arith.addf %18, %17 : vector<128x32xf32>
    %20 = arith.divf %18, %19 : vector<128x32xf32>
    %21 = arith.mulf %15, %20 : vector<128x32xf32>
    %cst_10 = arith.constant 0.000000e+00 : f32
    %22 = vector.broadcast %cst_10 : f32 to vector<2x10x10x32xf32>
    %c0_11 = arith.constant 0 : index
    %c0_12 = arith.constant 0 : index
    %c0_13 = arith.constant 0 : index
    %c0_14 = arith.constant 0 : index
    %23 = vector.load %arg10[%c0_11, %c0_12, %c0_13, %c0_14] : memref<2x10x10x32xf32, #tpu.memory_space<vmem>>, vector<2x10x10x32xf32>
    tpu.vector_store %arg10[%c0_11, %c0_12, %c0_13, %c0_14], %22 {strides = array<i32>} : memref<2x10x10x32xf32, #tpu.memory_space<vmem>>, vector<2x10x10x32xf32>,
    %24 = vector.shape_cast %21 : vector<128x32xf32> to vector<2x8x8x32xf32>
    %c0_15 = arith.constant 0 : index
    %c1 = arith.constant 1 : index
    %c1_16 = arith.constant 1 : index
    %c0_17 = arith.constant 0 : index
    %25 = vector.load %arg10[%c0_15, %c1, %c1_16, %c0_17] : memref<2x10x10x32xf32, #tpu.memory_space<vmem>>, vector<2x8x8x32xf32>
    tpu.vector_store %arg10[%c0_15, %c1, %c1_16, %c0_17], %24 {strides = array<i32>} : memref<2x10x10x32xf32, #tpu.memory_space<vmem>>, vector<2x8x8x32xf32>,
    %c0_18 = arith.constant 0 : index
    %c0_19 = arith.constant 0 : index
    %c0_20 = arith.constant 0 : index
    %c0_21 = arith.constant 0 : index
    %26 = vector.load %arg10[%c0_18, %c0_19, %c0_20, %c0_21] : memref<2x10x10x32xf32, #tpu.memory_space<vmem>>, vector<2x10x10x32xf32>
    %27 = vector.extract_strided_slice %26 {offsets = [0, 0, 0, 0], sizes = [2, 8, 8, 32], strides = [1, 1, 1, 1]} : vector<2x10x10x32xf32> to vector<2x8x8x32xf32>
    %28 = vector.extract_strided_slice %26 {offsets = [0, 0, 1, 0], sizes = [2, 8, 8, 32], strides = [1, 1, 1, 1]} : vector<2x10x10x32xf32> to vector<2x8x8x32xf32>
    %29 = vector.extract_strided_slice %26 {offsets = [0, 0, 2, 0], sizes = [2, 8, 8, 32], strides = [1, 1, 1, 1]} : vector<2x10x10x32xf32> to vector<2x8x8x32xf32>
    %30 = vector.extract_strided_slice %26 {offsets = [0, 1, 0, 0], sizes = [2, 8, 8, 32], strides = [1, 1, 1, 1]} : vector<2x10x10x32xf32> to vector<2x8x8x32xf32>
    %31 = vector.extract_strided_slice %26 {offsets = [0, 1, 1, 0], sizes = [2, 8, 8, 32], strides = [1, 1, 1, 1]} : vector<2x10x10x32xf32> to vector<2x8x8x32xf32>
    %32 = vector.extract_strided_slice %26 {offsets = [0, 1, 2, 0], sizes = [2, 8, 8, 32], strides = [1, 1, 1, 1]} : vector<2x10x10x32xf32> to vector<2x8x8x32xf32>
    %33 = vector.extract_strided_slice %26 {offsets = [0, 2, 0, 0], sizes = [2, 8, 8, 32], strides = [1, 1, 1, 1]} : vector<2x10x10x32xf32> to vector<2x8x8x32xf32>
    %34 = vector.extract_strided_slice %26 {offsets = [0, 2, 1, 0], sizes = [2, 8, 8, 32], strides = [1, 1, 1, 1]} : vector<2x10x10x32xf32> to vector<2x8x8x32xf32>
    %35 = vector.extract_strided_slice %26 {offsets = [0, 2, 2, 0], sizes = [2, 8, 8, 32], strides = [1, 1, 1, 1]} : vector<2x10x10x32xf32> to vector<2x8x8x32xf32>
    %36 = tpu.concatenate %27, %28, %29, %30, %31, %32, %33, %34, %35 in 3 : vector<2x8x8x32xf32>, vector<2x8x8x32xf32>, vector<2x8x8x32xf32>, vector<2x8x8x32xf32>, vector<2x8x8x32xf32>, vector<2x8x8x32xf32>, vector<2x8x8x32xf32>, vector<2x8x8x32xf32>, vector<2x8x8x32xf32> -> vector<2x8x8x288xf32>
    %37 = vector.shape_cast %36 : vector<2x8x8x288xf32> to vector<128x288xf32>
    %38 = arith.truncf %37 : vector<128x288xf32> to vector<128x288xbf16>
    %c0_22 = arith.constant 0 : index
    %c0_23 = arith.constant 0 : index
    %39 = vector.load %arg3[%c0_22, %c0_23] : memref<288x32xbf16, #tpu.memory_space<vmem>>, vector<288x32xbf16>
    %cst_24 = arith.constant dense<0.000000e+00> : vector<128x32xf32>
    %40 = tpu.matmul %38, %39, %cst_24 {dimension_numbers = #tpu.dot_dimension_numbers<[1], [0], [0], [1], [0, 0, 1, 1], [], []>} : vector<128x288xbf16>, vector<288x32xbf16>, vector<128x32xf32> -> vector<128x32xf32>
    %c0_25 = arith.constant 0 : index
    %c0_26 = arith.constant 0 : index
    %41 = vector.load %arg6[%c0_25, %c0_26] : memref<1x32xf32, #tpu.memory_space<vmem>>, vector<1x32xf32>
    %42 = vector.broadcast %41 : vector<1x32xf32> to vector<128x32xf32>
    %43 = arith.mulf %40, %42 : vector<128x32xf32>
    %c0_27 = arith.constant 0 : index
    %c0_28 = arith.constant 0 : index
    %44 = vector.load %arg7[%c0_27, %c0_28] : memref<1x32xf32, #tpu.memory_space<vmem>>, vector<1x32xf32>
    %45 = vector.broadcast %44 : vector<1x32xf32> to vector<128x32xf32>
    %46 = arith.addf %43, %45 : vector<128x32xf32>
    %47 = arith.negf %46 : vector<128x32xf32>
    %48 = math.exp %47 : vector<128x32xf32>
    %cst_29 = arith.constant 1.000000e+00 : f32
    %49 = vector.broadcast %cst_29 : f32 to vector<128x32xf32>
    %50 = arith.addf %49, %48 : vector<128x32xf32>
    %51 = arith.divf %49, %50 : vector<128x32xf32>
    %52 = arith.mulf %46, %51 : vector<128x32xf32>
    %c0_30 = arith.constant 0 : index
    %c0_31 = arith.constant 0 : index
    %53 = vector.load %arg8[%c0_30, %c0_31] : memref<32x128xf32, #tpu.memory_space<vmem>>, vector<32x128xf32>
    %cst_32 = arith.constant dense<0.000000e+00> : vector<32x32xf32>
    %54 = tpu.matmul %53, %52, %cst_32 {dimension_numbers = #tpu.dot_dimension_numbers<[1], [0], [0], [1], [0, 0, 1, 1], [], []>} : vector<32x128xf32>, vector<128x32xf32>, vector<32x32xf32> -> vector<32x32xf32>
    %cst_33 = arith.constant 0.111111112 : f32
    %55 = vector.broadcast %cst_33 : f32 to vector<32x32xf32>
    %56 = arith.mulf %54, %55 : vector<32x32xf32>
    %c0_34 = arith.constant 0 : index
    %c0_35 = arith.constant 0 : index
    %c0_36 = arith.constant 0 : index
    %57 = vector.load %arg9[%c0_34, %c0_35, %c0_36] : memref<1x32x32xf32, #tpu.memory_space<vmem>>, vector<1x32x32xf32>
    %58 = vector.shape_cast %57 : vector<1x32x32xf32> to vector<32x32xf32>
    %59 = vector.shape_cast %56 : vector<32x32xf32> to vector<1x32x32xf32>
    tpu.vector_store %arg9[%c0_34, %c0_35, %c0_36], %59 {strides = array<i32>} : memref<1x32x32xf32, #tpu.memory_space<vmem>>, vector<1x32x32xf32>,
    return
  }
  func.func @transform_0(%arg0: i32) -> (i32, i32, i32, i32) {
    %c0_i32 = arith.constant 0 : i32
    %c0_i32_0 = arith.constant 0 : i32
    %c0_i32_1 = arith.constant 0 : i32
    %c0_i32_2 = arith.constant 0 : i32
    return %arg0, %c0_i32, %c0_i32_0, %c0_i32_1 : i32, i32, i32, i32
  }
  func.func @transform_1(%arg0: i32) -> (i32, i32) {
    %c0_i32 = arith.constant 0 : i32
    %c0_i32_0 = arith.constant 0 : i32
    %c0_i32_1 = arith.constant 0 : i32
    return %c0_i32, %c0_i32_0 : i32, i32
  }
  func.func @transform_2(%arg0: i32) -> (i32, i32) {
    %c0_i32 = arith.constant 0 : i32
    %c0_i32_0 = arith.constant 0 : i32
    %c0_i32_1 = arith.constant 0 : i32
    return %c0_i32, %c0_i32_0 : i32, i32
  }
  func.func @transform_3(%arg0: i32) -> (i32, i32) {
    %c0_i32 = arith.constant 0 : i32
    %c0_i32_0 = arith.constant 0 : i32
    %c0_i32_1 = arith.constant 0 : i32
    return %c0_i32, %c0_i32_0 : i32, i32
  }
  func.func @transform_4(%arg0: i32) -> (i32, i32) {
    %c0_i32 = arith.constant 0 : i32
    %c0_i32_0 = arith.constant 0 : i32
    %c0_i32_1 = arith.constant 0 : i32
    return %c0_i32, %c0_i32_0 : i32, i32
  }
  func.func @transform_5(%arg0: i32) -> (i32, i32) {
    %c0_i32 = arith.constant 0 : i32
    %c0_i32_0 = arith.constant 0 : i32
    %c0_i32_1 = arith.constant 0 : i32
    return %c0_i32, %c0_i32_0 : i32, i32
  }
  func.func @transform_6(%arg0: i32) -> (i32, i32) {
    %c0_i32 = arith.constant 0 : i32
    %c0_i32_0 = arith.constant 0 : i32
    %c0_i32_1 = arith.constant 0 : i32
    return %c0_i32, %c0_i32_0 : i32, i32
  }
  func.func @transform_7(%arg0: i32) -> (i32, i32) {
    %c0_i32 = arith.constant 0 : i32
    %c0_i32_0 = arith.constant 0 : i32
    %c0_i32_1 = arith.constant 0 : i32
    return %c0_i32, %c0_i32_0 : i32, i32
  }
  func.func @transform_8(%arg0: i32) -> (i32, i32, i32) {
    %c0_i32 = arith.constant 0 : i32
    %c0_i32_0 = arith.constant 0 : i32
    %c0_i32_1 = arith.constant 0 : i32
    return %arg0, %c0_i32, %c0_i32_0 : i32, i32, i32
  }
}

</mosaic_0001>

<bundles_post_ra>
// kernel: tpu_custom_call.1
= control target key start
LH: loop header
LB: loop body
LE: loop exit
PB: predicated region body
PF: predicated region fallthrough
CT: control target
= control target key end

     0   :  { %vm99_vm0 = vcmask 1046528   ;;  %s2843_s19 = smov 32   ;;  %s2844_s16 = smov 16   ;;  %s4104_s0 = inlined_call_operand.vmem [shape: f32[2,9,9,16], index: 0, kind: input, shape index: {}]   ;;  %s4105_s1 = inlined_call_operand.vmem [shape: bf16[64,32], index: 1, kind: input, shape index: {}]   ;;  %s4106_s2 = inlined_call_operand.vmem [shape: bf16[288,32], index: 2, kind: input, shape index: {}]   ;;  %s4107_s3 = inlined_call_operand.vmem [shape: f32[1,32], index: 3, kind: input, shape index: {}]   ;;  %s4108_s4 = inlined_call_operand.vmem [shape: f32[1,32], index: 4, kind: input, shape index: {}]   ;;  %s4109_s5 = inlined_call_operand.vmem [shape: f32[1,32], index: 5, kind: input, shape index: {}]   ;;  %s4110_s6 = inlined_call_operand.vmem [shape: f32[1,32], index: 6, kind: input, shape index: {}]   ;;  %s4111_s7 = inlined_call_operand.vmem [shape: f32[32,128], index: 7, kind: input, shape index: {}]   ;;  %s4112_s8 = inlined_call_operand.hbm [shape: f32[1,32,32], index: 8, kind: output, shape index: {}]  }
   0x1   :  { %v2900_v0 = vld [vmem:[%s4104_s0 + $0x10] sm:$0xff]  ;;  %v2905_v1 = vld [vmem:[%s4104_s0 + $0x20] sm:$0xff]  ;;  %v34_v2 = vld [vmem:[%s4104_s0 + $0x18] sm:$0x1]  ;;  %s2845_s28 = smov 48  }
   0x2   :  { %v106_v3 = vrot.slane %v2905_v1, 1  ;;  %v2309_v4 = vpack.i.bf16 %v2905_v1, %v2900_v0  ;;  %v103_v5 = vrot.slane %v2900_v0, 1  ;;  %v36_v6 = vld [vmem:[%s4104_s0 + $0x28] sm:$0x1]  ;;  %v104_v7 = vrot.slane %v34_v2, 1  ;;  %v2920_v9 = vld [vmem:[%s4104_s0] sm:$0xff] }
   0x3   :  { %v107_v8 = vrot.slane %v36_v6, 1  ;;  %v32_v10 = vld [vmem:[%s4104_s0 + $0x8] sm:$0x1]  ;;  %v2928_v11 = vld [vmem:[%s4104_s0 + $0x30] sm:$0xff]  ;;  %v100_v13 = vrot.slane %v2920_v9, 1  ;;  %v2938_v15 = vld [vmem:[%s4104_s0 + $0x40] sm:$0xff] }
   0x4   :  { %2310 = vrot.lane.b32.xlu1 %v2309_v4, %s2843_s19  ;;  %v2932_v12 = vsel %vm99_vm0, %v103_v5, %v104_v7  ;;  %v101_v14 = vrot.slane %v32_v10, 1  ;;  %v109_v16 = vrot.slane %v2928_v11, 1  ;;  %v38_v17 = vld [vmem:[%s4104_s0 + $0x38] sm:$0x1]  ;;  %v112_v18 = vrot.slane %v2938_v15, 1  ;;  %v2953_v22 = vld [vmem:[%s4104_s0 + $0x60] sm:$0xff] }
   0x5   :  { %v2314_v19 = vpack.i.bf16 %v2938_v15, %v2928_v11  ;;  %v110_v20 = vrot.slane %v38_v17, 1  ;;  %v40_v21 = vld [vmem:[%s4104_s0 + $0x48] sm:$0x1]  ;;  %v108_v23 = vsel %vm99_vm0, %v106_v3, %v107_v8  ;;  %v2960_v26 = vld [vmem:[%s4104_s0 + $0x50] sm:$0xff]  ;;  %v42_v30 = vld [vmem:[%s4104_s0 + $0x58] sm:$0x1] }
   0x6   :  { %v102_v24 = vsel %vm99_vm0, %v100_v13, %v101_v14  ;;  %v113_v25 = vrot.slane %v40_v21, 1  ;;  %v44_v27 = vld [vmem:[%s4104_s0 + $0x68] sm:$0x1]  ;;  %v2973_v31 = vld [vmem:[%s4104_s0 + $0x70] sm:$0xff]  ;;  %v46_v32 = vld [vmem:[%s4104_s0 + $0x78] sm:$0x1]  ;;  %v2329_v51 = vpack.i.bf16 %v108_v23, %v2932_v12  ;;  %v2349_v21 = vpack.i.bf16 %v2953_v22, %v2960_v26 }
   0x7   :  { %v2319_v28 = vpack.i.bf16 %v2932_v12, %v102_v24  ;;  %v111_v29 = vsel %vm99_vm0, %v109_v16, %v110_v20  ;;  %v118_v33 = vrot.slane %v2953_v22, 1  ;;  %v119_v35 = vrot.slane %v44_v27, 1  ;;  %v47_v43 = vld [vmem:[%s4104_s0 + $0x80] sm:$0xff]  ;;  %v48_v44 = vld [vmem:[%s4104_s0 + $0x88] sm:$0x1]  ;;  %v2997_v46 = vld [vmem:[%s4104_s0 + $0x90] sm:$0xff] }
   0x8   :  { %2315 = vrot.lane.b32.xlu1 %v2314_v19, %s2843_s19  ;;  %v114_v34 = vsel %vm99_vm0, %v112_v18, %v113_v25  ;;  %v121_v36 = vrot.slane %v2973_v31, 1  ;;  %v2324_v37 = vpack.i.bf16 %v111_v29, %v108_v23  ;;  %v122_v39 = vrot.slane %v46_v32, 1  ;;  %v50_v47 = vld [vmem:[%s4104_s0 + $0x98] sm:$0x1]  ;;  %v3005_v48 = vld [vmem:[%s4104_s0 + $0xa0] sm:$0xff]  ;;  %v3012_v50 = vld [vmem:[%s4104_s0 + $0xb0] sm:$0xff] }
   0x9   :  { %2320 = vrot.lane.b32.xlu0 %v2319_v28, %s2844_s16  ;;  %v2334_v38 = vpack.i.bf16 %v114_v34, %v111_v29  ;;  %v115_v40 = vrot.slane %v2960_v26, 1  ;;  %v116_v41 = vrot.slane %v42_v30, 1  ;;  %v2985_v42 = vsel %vm99_vm0, %v118_v33, %v119_v35  ;;  %v52_v54 = vld [vmem:[%s4104_s0 + $0xa8] sm:$0x1]  ;;  %v54_v55 = vld [vmem:[%s4104_s0 + $0xb8] sm:$0x1] }
   0xa   :  { %v123_v45 = vsel %vm99_vm0, %v121_v36, %v122_v39  ;;  %v248_v52 = vrot.slane %v47_v43, 1  ;;  %v249_v53 = vrot.slane %v48_v44, 1  ;;  %v3025_v56 = vld [vmem:[%s4104_s0 + $0xc0] sm:$0xff]  ;;  %v124_v58 = vrot.slane %v2997_v46, 1  ;;  %v56_v61 = vld [vmem:[%s4104_s0 + $0xc8] sm:$0x1] }
   0xb   :  { %v2344_v49 = vpack.i.bf16 %v123_v45, %v2985_v42  ;;  %v117_v57 = vsel %vm99_vm0, %v115_v40, %v116_v41  ;;  %v125_v59 = vrot.slane %v50_v47, 1  ;;  %v127_v60 = vrot.slane %v3005_v48, 1  ;;  %v3036_v62 = vld [vmem:[%s4104_s0 + $0xd0] sm:$0xff]  ;;  %v2669_v2 = vld [vmem:[%s4105_s1] sm:$0xff]   ;;  %v58_v5 = vld [vmem:[%s4104_s0 + $0xd8] sm:$0x1] }
   0xc   :  { %2335 = vrot.lane.b32.xlu1 %v2334_v38, %s2845_s28  ;;  %v130_v63 = vrot.slane %v3012_v50, 1  ;;  %v2354_v3 = vpack.i.bf16 %v47_v43, %v2973_v31  ;;  %v131_v4 = vrot.slane %v54_v55, 1  ;;  %v3050_v6 = vld [vmem:[%s4104_s0 + $0xf0] sm:$0xff]  ;;  %v2670_v7 = vld [vmem:[%s4105_s1 + $0x8] sm:$0xff]   ;;  %v2339_v8 = vpack.i.bf16 %v117_v57, %v114_v34  ;;  %v62_v14 = vld [vmem:[%s4104_s0 + $0xf8] sm:$0x1]  ;;  %2186 = vmatprep.subr.bf16.mxu0 %v2669_v2 }
   0xd   :  { %2325 = vrot.lane.b32.xlu0 %v2324_v37, %s2844_s16  ;;  %v250_v10 = vsel %vm99_vm0, %v248_v52, %v249_v53  ;;  %v133_v12 = vrot.slane %v3025_v56, 1  ;;  %v134_v13 = vrot.slane %v56_v61, 1  ;;  %v128_v16 = vrot.slane %v52_v54, 1  ;;  %v3064_v17 = vld [vmem:[%s4104_s0 + $0x100] sm:$0xff]  ;;  %v64_v18 = vld [vmem:[%s4104_s0 + $0x108] sm:$0x1]  ;;  %2187 = vmatpush3.bf16.msra.mxu0 %v2669_v2 }
   0xe   :  { %v136_v19 = vrot.slane %v3036_v62, 1  ;;  %2188 = vmatprep.subr.bf16.mxu0 %v2670_v7  ;;  %v2671_v20 = vld [vmem:[%s4105_s1 + $0x10] sm:$0xff]   ;;  %v2364_v23 = vpack.i.bf16 %v250_v10, %v123_v45  ;;  %v132_v24 = vsel %vm99_vm0, %v130_v63, %v131_v4  ;;  %v137_v27 = vrot.slane %v58_v5, 1  ;;  %v2672_v33 = vld [vmem:[%s4105_s1 + $0x18] sm:$0xff]   ;;  %v3097_v41 = vld [vmem:[%s4104_s0 + $0xe0] sm:$0xff] }
   0xf   :  { %v135_v25 = vsel %vm99_vm0, %v133_v12, %v134_v13  ;;  %v142_v28 = vrot.slane %v3050_v6, 1  ;;  %v143_v29 = vrot.slane %v62_v14, 1  ;;  %v145_v30 = vrot.slane %v3064_v17, 1 }
  0x10   :  { %2345 = vrot.lane.b32.xlu1 %v2344_v49, %s2844_s16  ;;  %v146_v32 = vrot.slane %v64_v18, 1  ;;  %v2374_v34 = vpack.i.bf16 %v135_v25, %v132_v24  ;;  %v2359_v35 = vpack.i.bf16 %v2985_v42, %v117_v57  ;;  %v126_v36 = vsel %vm99_vm0, %v124_v58, %v125_v59  ;;  %v60_v42 = vld [vmem:[%s4104_s0 + $0xe8] sm:$0x1] }
  0x11   :  { %2330 = vrot.lane.b32.xlu0 %v2329_v51, %s2845_s28  ;;  %2189 = vmatpush3.bf16.msra.mxu0 %v2670_v7  ;;  %v129_v37 = vsel %vm99_vm0, %v127_v60, %v128_v16  ;;  %v2384_v38 = vpack.i.bf16 %v3036_v62, %v3025_v56  ;;  %v138_v40 = vsel %vm99_vm0, %v136_v19, %v137_v27 }
  0x12   :  { %2190 = vmatprep.subr.bf16.mxu0 %v2671_v20  ;;  %v2369_v39 = vpack.i.bf16 %v129_v37, %v126_v36  ;;  %v2394_v43 = vpack.i.bf16 %v138_v40, %v135_v25  ;;  %v2379_v44 = vpack.i.bf16 %v3012_v50, %v3005_v48  ;;  %v144_v45 = vsel %vm99_vm0, %v142_v28, %v143_v29 }
  0x13   :  { %v147_v47 = vsel %vm99_vm0, %v145_v30, %v146_v32 }
  0x14   :  { %2355 = vrot.lane.b32.xlu1 %v2354_v3, %s2843_s19 }
  0x15   :  { %2340 = vrot.lane.b32.xlu0 %v2339_v8, %s2844_s16  ;;  %2191 = vmatpush3.bf16.msra.mxu0 %v2671_v20 }
  0x16   :  { %2192 = vmatprep.subr.bf16.mxu0 %v2672_v33 }
  0x18   :  { %2365 = vrot.lane.b32.xlu1 %v2364_v23, %s2845_s28 }
  0x19   :  { %2350 = vrot.lane.b32.xlu0 %v2349_v21, %s2843_s19  ;;  %2193 = vmatpush3.bf16.msra.mxu0 %v2672_v33 }
  0x1c   :  { %2375 = vrot.lane.b32.xlu1 %v2374_v34, %s2844_s16 }
  0x1d   :  { %2360 = vrot.lane.b32.xlu0 %v2359_v35, %s2845_s28 }
  0x20   :  { %2385 = vrot.lane.b32.xlu1 %v2384_v38, %s2843_s19 }
  0x21   :  { %2370 = vrot.lane.b32.xlu0 %v2369_v39, %s2844_s16 }
  0x22   :  { %13 = vsyncpa [#allocation4], 0  ;;  %v139_v49 = vrot.slane %v3097_v41, 1  ;;  %v140_v51 = vrot.slane %v60_v42, 1  ;;  %v65_v52 = vld [vmem:[%s4104_s0 + $0x110] sm:$0xff]  ;;  %v2404_v54 = vpack.i.bf16 %v147_v47, %v144_v45  ;;  %v2389_v55 = vpack.i.bf16 %v132_v24, %v129_v37  ;;  %s2848_s11 = smov 64  }
  0x23   :  { %v66_v53 = vld [vmem:[%s4104_s0 + $0x118] sm:$0x1]  ;;  %v251_v57 = vrot.slane %v65_v52, 1  ;;  %v2414_v60 = vpack.i.bf16 %v65_v52, %v3064_v17  ;;  %v2409_v3 = vpack.i.bf16 %v3050_v6, %v3097_v41  ;;  %vm302_vm1 = vcmask 130048   ;;  %s2849_s0 = smov [#allocation3]  }
  0x24   :  { %2395 = vrot.lane.b32.xlu1 %v2394_v43, %s2845_s28  ;;  %v252_v58 = vrot.slane %v66_v53, 1  ;;  %v141_v59 = vsel %vm99_vm0, %v139_v49, %v140_v51  ;;  %vm319_vm2 = vcmask 261120   ;;  %vm336_vm3 = vcmask 392192  }
  0x25   :  { %2380 = vrot.lane.b32.xlu0 %v2379_v44, %s2843_s19  ;;  %v2399_v61 = vpack.i.bf16 %v141_v59, %v138_v40  ;;  %v2419_v4 = vpack.i.bf16 %v144_v45, %v141_v59  ;;  %vm393_vm4 = vcmask 523264   ;;  %vm674_vm5 = vcmask 254976  }
  0x26   :  { %v253_v63 = vsel %vm99_vm0, %v251_v57, %v252_v58  ;;  %vm899_vm6 = vcmask 1045504   ;;  %vm1284_vm7 = vcmask 785408  }
  0x27   :  { %v2424_v2 = vpack.i.bf16 %v253_v63, %v147_v47 }
  0x28   :  { %2405 = vrot.lane.b32.xlu1 %v2404_v54, %s2844_s16 }
  0x29   :  { %2390 = vrot.lane.b32.xlu0 %v2389_v55, %s2845_s28 }
  0x2c   :  { %2415 = vrot.lane.b32.xlu1 %v2414_v60, %s2843_s19 }
  0x2d   :  { %2400 = vrot.lane.b32.xlu0 %v2399_v61, %s2844_s16  ;;  %s1995_s16 = sshll.u32 %s2849_s0, 4  ;;  %s1996_s16 = int_to_ptr.vmem [resolvable:$true] %s1995_s16 }
  0x2e   :  { %p2824_p1 = scmp.lt.s32.totalorder %s1996_s16, %s1996_s16 }
  0x30   :  { %2425 = vrot.lane.b32.xlu1 %v2424_v2, %s2845_s28 }
  0x31   :  { %2410 = vrot.lane.b32.xlu0 %v2409_v3, %s2843_s19 }
  0x35   :  { %2420 = vrot.lane.b32.xlu0 %v2419_v4, %s2845_s28 }
  0x76   :  { %v2311_v5 = vpop.permute.xlu1 %2310 }
  0x77   :  { %v2313_v24 = vunpack.i.h.bf16 %v2311_v5  ;;  %v2312_v25 = vunpack.i.l.bf16 %v2311_v5 }
  0x7a   :  { %v2316_v7 = vpop.permute.xlu1 %2315 }
  0x7b   :  { %v2321_v8 = vpop.permute.xlu0 %2320  ;;  %v2318_v14 = vunpack.i.h.bf16 %v2316_v7  ;;  %v2317_v16 = vunpack.i.l.bf16 %v2316_v7 }
  0x7c   :  { %v2323_v10 = vunpack.i.h.bf16 %v2321_v8  ;;  %v2322_v12 = vunpack.i.l.bf16 %v2321_v8 }
  0x7e   :  { %v2336_v13 = vpop.permute.xlu1 %2335  ;;  %v304_v27 = vsel %vm302_vm1, %v2900_v0, %v2323_v10  ;;  %v303_v28 = vsel %vm302_vm1, %v2920_v9, %v2322_v12 }
  0x7f   :  { %v2326_v18 = vpop.permute.xlu0 %2325  ;;  %v2338_v21 = vunpack.i.h.bf16 %v2336_v13  ;;  %v2337_v23 = vunpack.i.l.bf16 %v2336_v13  ;;  %v320_v40 = vsel %vm319_vm2, %v303_v28, %v2312_v25 }
  0x80   :  { %v2328_v19 = vunpack.i.h.bf16 %v2326_v18  ;;  %v2327_v20 = vunpack.i.l.bf16 %v2326_v18 }
  0x82   :  { %v306_v29 = vsel %vm302_vm1, %v2928_v11, %v2328_v19  ;;  %v305_v30 = vsel %vm302_vm1, %v2905_v1, %v2327_v20  ;;  %v2346_v32 = vpop.permute.xlu1 %2345  ;;  %v321_v11 = vsel %vm319_vm2, %v304_v27, %v2313_v24 }
  0x83   :  { %v322_v33 = vsel %vm319_vm2, %v305_v30, %v2317_v16  ;;  %v323_v34 = vsel %vm319_vm2, %v306_v29, %v2318_v14  ;;  %v2331_v35 = vpop.permute.xlu0 %2330  ;;  %v2348_v36 = vunpack.i.h.bf16 %v2346_v32  ;;  %v2347_v37 = vunpack.i.l.bf16 %v2346_v32 }
  0x84   :  { %v339_v38 = vsel %vm336_vm3, %v322_v33, %v2337_v23  ;;  %v340_v0 = vsel %vm336_vm3, %v323_v34, %v2338_v21  ;;  %v2333_v39 = vunpack.i.h.bf16 %v2331_v35  ;;  %v2332_v9 = vunpack.i.l.bf16 %v2331_v35 }
  0x85   :  { %v354_v44 = vpack.c.bf16 %v340_v0, %v339_v38  ;;  %v310_v54 = vsel %vm302_vm1, %v2973_v31, %v2348_v36  ;;  %v309_v55 = vsel %vm302_vm1, %v2953_v22, %v2347_v37 }
  0x86   :  { %v337_v1 = vsel %vm336_vm3, %v320_v40, %v2332_v9  ;;  %v338_v42 = vsel %vm336_vm3, %v321_v11, %v2333_v39  ;;  %v2356_v43 = vpop.permute.xlu1 %2355 }
  0x87   :  { %v2341_v45 = vpop.permute.xlu0 %2340  ;;  %v353_v47 = vpack.c.bf16 %v338_v42, %v337_v1  ;;  %v2358_v49 = vunpack.i.h.bf16 %v2356_v43  ;;  %v2357_v51 = vunpack.i.l.bf16 %v2356_v43 }
  0x88   :  { %v2343_v52 = vunpack.i.h.bf16 %v2341_v45  ;;  %v2342_v53 = vunpack.i.l.bf16 %v2341_v45 }
  0x89   :  { %2194 = vmatprep.mubr.msk.bf16.mxu0 %vm393_vm4, %v353_v47  ;;  %v326_v59 = vsel %vm319_vm2, %v309_v55, %v2357_v51  ;;  %v327_v60 = vsel %vm319_vm2, %v310_v54, %v2358_v49 }
  0x8a   :  { %2195 = vmatmul.mubr.msk.bf16.vlgmr.msra.gmra.mrb[0].mxu0 %vm393_vm4, %v354_v44  ;;  %v2366_v57 = vpop.permute.xlu1 %2365  ;;  %v308_v2 = vsel %vm302_vm1, %v2960_v26, %v2343_v52  ;;  %v307_v31 = vsel %vm302_vm1, %v2938_v15, %v2342_v53 }
  0x8b   :  { %v2351_v58 = vpop.permute.xlu0 %2350  ;;  %v2368_v61 = vunpack.i.h.bf16 %v2366_v57  ;;  %v2367_v63 = vunpack.i.l.bf16 %v2366_v57 }
  0x8c   :  { %v2353_v3 = vunpack.i.h.bf16 %v2351_v58  ;;  %v2352_v22 = vunpack.i.l.bf16 %v2351_v58 }
  0x8d   :  { %v343_v10 = vsel %vm336_vm3, %v326_v59, %v2367_v63  ;;  %v344_v12 = vsel %vm336_vm3, %v327_v60, %v2368_v61 }
  0x8e   :  { %v2376_v4 = vpop.permute.xlu1 %2375  ;;  %v324_v5 = vsel %vm319_vm2, %v307_v31, %v2352_v22  ;;  %v325_v7 = vsel %vm319_vm2, %v308_v2, %v2353_v3  ;;  %v356_v19 = vpack.c.bf16 %v344_v12, %v343_v10 }
  0x8f   :  { %v2361_v8 = vpop.permute.xlu0 %2360  ;;  %v2378_v16 = vunpack.i.h.bf16 %v2376_v4  ;;  %v2377_v18 = vunpack.i.l.bf16 %v2376_v4 }
  0x90   :  { %v2363_v13 = vunpack.i.h.bf16 %v2361_v8  ;;  %v2362_v14 = vunpack.i.l.bf16 %v2361_v8 }
  0x91   :  { %v314_v29 = vsel %vm302_vm1, %v3025_v56, %v2378_v16  ;;  %v313_v30 = vsel %vm302_vm1, %v3012_v50, %v2377_v18 }
  0x92   :  { %v341_v26 = vsel %vm336_vm3, %v324_v5, %v2362_v14  ;;  %v342_v15 = vsel %vm336_vm3, %v325_v7, %v2363_v13  ;;  %v2386_v20 = vpop.permute.xlu1 %2385 }
  0x93   :  { %v355_v21 = vpack.c.bf16 %v342_v15, %v341_v26  ;;  %v2371_v23 = vpop.permute.xlu0 %2370  ;;  %v2388_v24 = vunpack.i.h.bf16 %v2386_v20  ;;  %v2387_v25 = vunpack.i.l.bf16 %v2386_v20  ;;  %v2674_v20 = vld [vmem:[%s4106_s2 + $0x88] sm:$0xff]  }
  0x94   :  { %v2373_v27 = vunpack.i.h.bf16 %v2371_v23  ;;  %v2372_v28 = vunpack.i.l.bf16 %v2371_v23 }
  0x95   :  { %2198 = vmatprep.mubr.msk.bf16.mxu0 %vm393_vm4, %v355_v21  ;;  %v330_v34 = vsel %vm319_vm2, %v313_v30, %v2387_v25  ;;  %v331_v35 = vsel %vm319_vm2, %v314_v29, %v2388_v24  ;;  %v3250_v21 = vld [vmem:[%s4107_s3] ss:$0 sm:$0xff] }
  0x96   :  { %2199 = vmatmul.mubr.msk.bf16.gmra.mrb[4].mxu0 %vm393_vm4, %v356_v19  ;;  %v2396_v32 = vpop.permute.xlu1 %2395  ;;  %v312_v38 = vsel %vm302_vm1, %v3005_v48, %v2373_v27  ;;  %v311_v56 = vsel %vm302_vm1, %v2997_v46, %v2372_v28  ;;  %v2673_v19 = vld [vmem:[%s4106_s2 + $0x80] sm:$0xff]  }
  0x97   :  { %v2381_v33 = vpop.permute.xlu0 %2380  ;;  %v2398_v36 = vunpack.i.h.bf16 %v2396_v32  ;;  %v2397_v37 = vunpack.i.l.bf16 %v2396_v32  ;;  %2210 = vmatprep.subr.bf16.mxu0 %v2673_v19  ;;  %v3255_v24 = vld [vmem:[%s4108_s4] ss:$0 sm:$0xff]  ;;  %s2847_s4 = smov 96  }
  0x98   :  { %v2383_v0 = vunpack.i.h.bf16 %v2381_v33  ;;  %v2382_v50 = vunpack.i.l.bf16 %v2381_v33  ;;  %2211 = vmatpush3.bf16.msra.mxu0 %v2673_v19 }
  0x99   :  { %v347_v1 = vsel %vm336_vm3, %v330_v34, %v2397_v37  ;;  %v348_v42 = vsel %vm336_vm3, %v331_v35, %v2398_v36  ;;  %2212 = vmatprep.subr.bf16.mxu0 %v2674_v20 }
  0x9a   :  { %v2406_v39 = vpop.permute.xlu1 %2405  ;;  %v328_v9 = vsel %vm319_vm2, %v311_v56, %v2382_v50  ;;  %v329_v40 = vsel %vm319_vm2, %v312_v38, %v2383_v0  ;;  %v358_v49 = vpack.c.bf16 %v348_v42, %v347_v1 }
  0x9b   :  { %v2391_v11 = vpop.permute.xlu0 %2390  ;;  %v2408_v45 = vunpack.i.h.bf16 %v2406_v39  ;;  %v2407_v47 = vunpack.i.l.bf16 %v2406_v39 }
  0x9c   :  { %v2393_v43 = vunpack.i.h.bf16 %v2391_v11  ;;  %v2392_v44 = vunpack.i.l.bf16 %v2391_v11  ;;  %2213 = vmatpush3.bf16.msra.mxu0 %v2674_v20  ;;  %v2677_v11 = vld [vmem:[%s4106_s2 + $0x48] sm:$0xff]  }
  0x9d   :  { %v318_v59 = vsel %vm302_vm1, %v3064_v17, %v2408_v45  ;;  %v317_v60 = vsel %vm302_vm1, %v3050_v6, %v2407_v47 }
  0x9e   :  { %v345_v48 = vsel %vm336_vm3, %v328_v9, %v2392_v44  ;;  %v346_v46 = vsel %vm336_vm3, %v329_v40, %v2393_v43  ;;  %v2416_v51 = vpop.permute.xlu1 %2415  ;;  %v2675_v9 = vld [vmem:[%s4106_s2 + $0x40] sm:$0xff]  }
  0x9f   :  { %v357_v52 = vpack.c.bf16 %v346_v46, %v345_v48  ;;  %v2401_v53 = vpop.permute.xlu0 %2400  ;;  %v2418_v54 = vunpack.i.h.bf16 %v2416_v51  ;;  %v2417_v55 = vunpack.i.l.bf16 %v2416_v51  ;;  %v2676_v40 = vld [vmem:[%s4106_s2] sm:$0xff]   ;;  %2092 = vmatprep.subr.bf16.mxu1 %v2675_v9  ;;  %v2678_v46 = vld [vmem:[%s4106_s2 + $0x8] sm:$0xff]  }
  0xa0   :  { %v2403_v57 = vunpack.i.h.bf16 %v2401_v53  ;;  %v2402_v58 = vunpack.i.l.bf16 %v2401_v53  ;;  %2093 = vmatpush3.bf16.msra.mxu1 %v2676_v40 }
  0xa1   :  { %2202 = vmatprep.mubr.msk.bf16.mxu0 %vm393_vm4, %v357_v52  ;;  %v334_v2 = vsel %vm319_vm2, %v317_v60, %v2417_v55  ;;  %v335_v31 = vsel %vm319_vm2, %v318_v59, %v2418_v54  ;;  %2094 = vmatprep.subr.bf16.mxu1 %v2677_v11  ;;  %v2679_v52 = vld [vmem:[%s4106_s2 + $0x50] sm:$0xff]  }
  0xa2   :  { %2203 = vmatmul.mubr.msk.bf16.gmra.mrb[8].mxu0 %vm393_vm4, %v358_v49  ;;  %v2426_v61 = vpop.permute.xlu1 %2425  ;;  %v316_v4 = vsel %vm302_vm1, %v3097_v41, %v2403_v57  ;;  %v315_v17 = vsel %vm302_vm1, %v3036_v62, %v2402_v58  ;;  %v2846_v62 = vmov 0.0  }
  0xa3   :  { %v2411_v63 = vpop.permute.xlu0 %2410  ;;  %v2428_v3 = vunpack.i.h.bf16 %v2426_v61  ;;  %v2427_v22 = vunpack.i.l.bf16 %v2426_v61  ;;  %680 = vst.msk [vmem:[#allocation2 + $0x30] sm:$0xff] %vm319_vm2, %v2846_v62  ;;  %673 = vst.msk [vmem:[#allocation2] sm:$0xff] %vm319_vm2, %v2846_v62 }
  0xa4   :  { %v2413_v5 = vunpack.i.h.bf16 %v2411_v63  ;;  %v2412_v6 = vunpack.i.l.bf16 %v2411_v63  ;;  %681 = vst.msk [vmem:[#allocation2 + $0x38] sm:$0x3] %vm674_vm5, %v2846_v62  ;;  %675 = vst.msk [vmem:[#allocation2 + $0x8] sm:$0x3] %vm674_vm5, %v2846_v62  ;;  %2095 = vmatpush3.bf16.msra.mxu1 %v2678_v46  ;;  %v2680_v63 = vld [vmem:[%s4106_s2 + $0x10] sm:$0xff]  }
  0xa5   :  { %v351_v12 = vsel %vm336_vm3, %v334_v2, %v2427_v22  ;;  %v352_v13 = vsel %vm336_vm3, %v335_v31, %v2428_v3  ;;  %676 = vst.msk [vmem:[#allocation2 + $0x10] sm:$0xff] %vm319_vm2, %v2846_v62  ;;  %678 = vst.msk [vmem:[#allocation2 + $0x20] sm:$0xff] %vm319_vm2, %v2846_v62  ;;  %2096 = vmatprep.subr.bf16.mxu1 %v2679_v52  ;;  %v2681_v22 = vld [vmem:[%s4106_s2 + $0x58] sm:$0xff]  }
  0xa6   :  { %v332_v7 = vsel %vm319_vm2, %v315_v17, %v2412_v6  ;;  %v333_v8 = vsel %vm319_vm2, %v316_v4, %v2413_v5  ;;  %v360_v26 = vpack.c.bf16 %v352_v13, %v351_v12  ;;  %677 = vst.msk [vmem:[#allocation2 + $0x18] sm:$0x3] %vm674_vm5, %v2846_v62  ;;  %679 = vst.msk [vmem:[#allocation2 + $0x28] sm:$0x3] %vm674_vm5, %v2846_v62 }
  0xa7   :  { %v2421_v10 = vpop.permute.xlu0 %2420  ;;  %682 = vst.msk [vmem:[#allocation2 + $0x40] sm:$0xff] %vm319_vm2, %v2846_v62  ;;  %684 = vst.msk [vmem:[#allocation2 + $0x50] sm:$0xff] %vm319_vm2, %v2846_v62 }
  0xa8   :  { %v2423_v14 = vunpack.i.h.bf16 %v2421_v10  ;;  %v2422_v16 = vunpack.i.l.bf16 %v2421_v10  ;;  %683 = vst.msk [vmem:[#allocation2 + $0x48] sm:$0x3] %vm674_vm5, %v2846_v62  ;;  %685 = vst.msk [vmem:[#allocation2 + $0x58] sm:$0x3] %vm674_vm5, %v2846_v62  ;;  %2097 = vmatpush3.bf16.msra.mxu1 %v2680_v63 }
  0xa9   :  { %686 = vst.msk [vmem:[#allocation2 + $0x60] sm:$0xff] %vm319_vm2, %v2846_v62  ;;  %688 = vst.msk [vmem:[#allocation2 + $0x70] sm:$0xff] %vm319_vm2, %v2846_v62  ;;  %2098 = vmatprep.subr.bf16.mxu1 %v2681_v22 }
  0xaa   :  { %v349_v18 = vsel %vm336_vm3, %v332_v7, %v2422_v16  ;;  %v350_v41 = vsel %vm336_vm3, %v333_v8, %v2423_v14  ;;  %687 = vst.msk [vmem:[#allocation2 + $0x68] sm:$0x3] %vm674_vm5, %v2846_v62  ;;  %689 = vst.msk [vmem:[#allocation2 + $0x78] sm:$0x3] %vm674_vm5, %v2846_v62 }
  0xab   :  { %v359_v15 = vpack.c.bf16 %v350_v41, %v349_v18  ;;  %690 = vst.msk [vmem:[#allocation2 + $0x80] sm:$0xff] %vm319_vm2, %v2846_v62  ;;  %692 = vst.msk [vmem:[#allocation2 + $0x90] sm:$0xff] %vm319_vm2, %v2846_v62 }
  0xac   :  { %691 = vst.msk [vmem:[#allocation2 + $0x88] sm:$0x3] %vm674_vm5, %v2846_v62  ;;  %693 = vst.msk [vmem:[#allocation2 + $0x98] sm:$0x3] %vm674_vm5, %v2846_v62 }
  0xad   :  { %2206 = vmatprep.mubr.msk.bf16.mxu0 %vm393_vm4, %v359_v15  ;;  %694 = vst.msk [vmem:[#allocation2 + $0xa0] sm:$0xff] %vm319_vm2, %v2846_v62  ;;  %696 = vst.msk [vmem:[#allocation2 + $0xb0] sm:$0xff] %vm319_vm2, %v2846_v62 }
  0xae   :  { %2207 = vmatmul.mubr.msk.bf16.gmra.mrb[12].mxu0 %vm393_vm4, %v360_v26  ;;  %695 = vst.msk [vmem:[#allocation2 + $0xa8] sm:$0x3] %vm674_vm5, %v2846_v62  ;;  %697 = vst.msk [vmem:[#allocation2 + $0xb8] sm:$0x3] %vm674_vm5, %v2846_v62 }
  0xaf   :  { %698 = vst.msk [vmem:[#allocation2 + $0xc0] sm:$0xff] %vm319_vm2, %v2846_v62  ;;  %700 = vst.msk [vmem:[#allocation2 + $0xd0] sm:$0xff] %vm319_vm2, %v2846_v62 }
  0xb0   :  { %699 = vst.msk [vmem:[#allocation2 + $0xc8] sm:$0x3] %vm674_vm5, %v2846_v62  ;;  %701 = vst.msk [vmem:[#allocation2 + $0xd8] sm:$0x3] %vm674_vm5, %v2846_v62 }
  0xb1   :  { %702 = vst.msk [vmem:[#allocation2 + $0xe0] sm:$0xff] %vm319_vm2, %v2846_v62  ;;  %704 = vst.msk [vmem:[#allocation2 + $0xf0] sm:$0xff] %vm319_vm2, %v2846_v62 }
  0xb2   :  { %703 = vst.msk [vmem:[#allocation2 + $0xe8] sm:$0x3] %vm674_vm5, %v2846_v62  ;;  %705 = vst.msk [vmem:[#allocation2 + $0xf8] sm:$0x3] %vm674_vm5, %v2846_v62 }
  0xb3   :  { %706 = vst.msk [vmem:[#allocation2 + $0x100] sm:$0xff] %vm319_vm2, %v2846_v62  ;;  %708 = vst.msk [vmem:[#allocation2 + $0x110] sm:$0xff] %vm319_vm2, %v2846_v62 }
  0xb4   :  { %707 = vst.msk [vmem:[#allocation2 + $0x108] sm:$0x3] %vm674_vm5, %v2846_v62  ;;  %709 = vst.msk [vmem:[#allocation2 + $0x118] sm:$0x3] %vm674_vm5, %v2846_v62 }
  0xb5   :  { %710 = vst.msk [vmem:[#allocation2 + $0x120] sm:$0xff] %vm319_vm2, %v2846_v62  ;;  %712 = vst.msk [vmem:[#allocation2 + $0x130] sm:$0xff] %vm319_vm2, %v2846_v62 }
  0xb6   :  { %711 = vst.msk [vmem:[#allocation2 + $0x128] sm:$0x3] %vm674_vm5, %v2846_v62  ;;  %713 = vst.msk [vmem:[#allocation2 + $0x138] sm:$0x3] %vm674_vm5, %v2846_v62 }
 0x15d   :  { %v2196_v23 = vpop.f32.mrb[0].mxu0 }
 0x15e   :  { %v524_v25 = vmul.f32 %v2196_v23, %v3250_v21  ;;  %v452_v27 = vpop.f32.mrb[1].mxu0 }
 0x15f   :  { %v522_v28 = vmul.f32 %v3250_v21, %v452_v27  ;;  %v2197_v29 = vpop.f32.mrb[2].mxu0 }
 0x160   :  { %v3260_v30 = vadd.f32 %v3255_v24, %v524_v25  ;;  %v525_v32 = vmul.f32 %v2197_v29, %v3250_v21  ;;  %v455_v33 = vpop.f32.mrb[3].mxu0 }
 0x161   :  { %v3264_v34 = vadd.f32 %v3255_v24, %v522_v28  ;;  %v523_v35 = vmul.f32 %v3250_v21, %v455_v33 }
 0x162   :  { %v2022_v36 = vmul.f32 -1.442695, %v3260_v30  ;;  %v3269_v37 = vadd.f32 %v3255_v24, %v525_v32 }
 0x163   :  { %v2020_v38 = vmul.f32 -1.442695, %v3264_v34  ;;  %v3273_v56 = vadd.f32 %v3255_v24, %v523_v35 }
 0x164   :  { %2691 = vpow2.f32 %v2022_v36  ;;  %v2023_v0 = vmul.f32 -1.442695, %v3269_v37  ;;  %v2682_v36 = vld [vmem:[%s4106_s2 + $0x18] sm:$0xff]  }
 0x165   :  { %2693 = vpow2.f32 %v2020_v38  ;;  %v2021_v50 = vmul.f32 -1.442695, %v3273_v56  ;;  %2099 = vmatpush3.bf16.msra.mxu1 %v2682_v36 }
 0x166   :  { %2695 = vpow2.f32 %v2023_v0 }
 0x167   :  { %2697 = vpow2.f32 %v2021_v50  ;;  %v3347_v50 = vld [vmem:[#allocation2 + $0x8] sm:$0x3] }
 0x169   :  { %v2200_v39 = vpop.f32.mrb[4].mxu0 }
 0x16a   :  { %v528_v1 = vmul.f32 %v2200_v39, %v3250_v21  ;;  %v468_v42 = vpop.f32.mrb[5].mxu0 }
 0x16b   :  { %v526_v43 = vmul.f32 %v3250_v21, %v468_v42  ;;  %v2201_v44 = vpop.f32.mrb[6].mxu0 }
 0x16c   :  { %v3289_v45 = vadd.f32 %v3255_v24, %v528_v1  ;;  %v529_v47 = vmul.f32 %v2201_v44, %v3250_v21  ;;  %v471_v48 = vpop.f32.mrb[7].mxu0  ;;  %v804_v44 = vrot.slane %v3347_v50, 1 }
 0x16d   :  { %v3296_v49 = vadd.f32 %v3255_v24, %v526_v43  ;;  %v527_v51 = vmul.f32 %v3250_v21, %v471_v48 }
 0x16e   :  { %v2692_v53 = vpop.eup %2691  ;;  %v2026_v54 = vmul.f32 -1.442695, %v3289_v45  ;;  %v3304_v55 = vadd.f32 %v3255_v24, %v529_v47 }
 0x16f   :  { %v2694_v57 = vpop.eup %2693  ;;  %v611_v58 = vadd.f32 1.0, %v2692_v53  ;;  %v3307_v59 = vadd.f32 %v3255_v24, %v527_v51  ;;  %v2024_v3 = vmul.f32 -1.442695, %v3296_v49 }
 0x170   :  { %v2696_v60 = vpop.eup %2695  ;;  %v609_v61 = vadd.f32 1.0, %v2694_v57  ;;  %2699 = vpow2.f32 %v2026_v54  ;;  %v2027_v17 = vmul.f32 -1.442695, %v3304_v55 }
 0x171   :  { %v2698_v2 = vpop.eup %2697  ;;  %2701 = vrcp.f32 %v611_v58  ;;  %v612_v31 = vadd.f32 1.0, %v2696_v60  ;;  %v2025_v5 = vmul.f32 -1.442695, %v3307_v59 }
 0x172   :  { %2703 = vrcp.f32 %v609_v61  ;;  %v610_v4 = vadd.f32 1.0, %v2698_v2 }
 0x173   :  { %2705 = vrcp.f32 %v612_v31 }
 0x174   :  { %2707 = vrcp.f32 %v610_v4 }
 0x175   :  { %2709 = vpow2.f32 %v2024_v3  ;;  %v2204_v6 = vpop.f32.mrb[8].mxu0 }
 0x176   :  { %2711 = vpow2.f32 %v2027_v17  ;;  %v532_v7 = vmul.f32 %v2204_v6, %v3250_v21  ;;  %v484_v8 = vpop.f32.mrb[9].mxu0 }
 0x177   :  { %2713 = vpow2.f32 %v2025_v5  ;;  %v530_v10 = vmul.f32 %v3250_v21, %v484_v8  ;;  %v2205_v12 = vpop.f32.mrb[10].mxu0  ;;  %v901_v5 = vrot.slane %v3347_v50, 2 }
 0x178   :  { %v3321_v13 = vadd.f32 %v3255_v24, %v532_v7  ;;  %v533_v14 = vmul.f32 %v2205_v12, %v3250_v21  ;;  %v487_v16 = vpop.f32.mrb[11].mxu0 }
 0x179   :  { %v3325_v18 = vadd.f32 %v3255_v24, %v530_v10  ;;  %v531_v41 = vmul.f32 %v3250_v21, %v487_v16 }
 0x17a   :  { %v2700_v26 = vpop.eup %2699  ;;  %v2030_v15 = vmul.f32 -1.442695, %v3321_v13  ;;  %v3330_v62 = vadd.f32 %v3255_v24, %v533_v14 }
 0x17b   :  { %v2702_v19 = vpop.eup %2701  ;;  %v615_v20 = vadd.f32 1.0, %v2700_v26  ;;  %v2028_v23 = vmul.f32 -1.442695, %v3325_v18  ;;  %v3334_v25 = vadd.f32 %v3255_v24, %v531_v41 }
 0x17c   :  { %v2704_v27 = vpop.eup %2703  ;;  %v659_v28 = vmul.f32 %v2702_v19, %v3260_v30  ;;  %2715 = vpow2.f32 %v2030_v15  ;;  %v2031_v29 = vmul.f32 -1.442695, %v3330_v62  ;;  %v3345_v30 = vld [vmem:[#allocation2] sm:$0xff] }
 0x17d   :  { %v2706_v32 = vpop.eup %2705  ;;  %v657_v33 = vmul.f32 %v2704_v27, %v3264_v34  ;;  %2717 = vrcp.f32 %v615_v20  ;;  %v2029_v35 = vmul.f32 -1.442695, %v3334_v25  ;;  %v2683_v34 = vld [vmem:[%s4106_s2 + $0x60] sm:$0xff]   ;;  %v803_v43 = vrot.slane %v3345_v30, 1 }
 0x17e   :  { %v2708_v38 = vpop.eup %2707  ;;  %717 = vst.msk [vmem:[#allocation2 + $0x31] sm:$0xff] %vm319_vm2, %v659_v28  ;;  %v660_v0 = vmul.f32 %v2706_v32, %v3269_v37  ;;  %2719 = vpow2.f32 %v2028_v23  ;;  %2100 = vmatprep.subr.bf16.mxu1 %v2683_v34  ;;  %v900_v31 = vrot.slane %v3345_v30, 2 }
 0x17f   :  { %v2710_v39 = vpop.eup %2709  ;;  %715 = vst.msk [vmem:[#allocation2 + $0x11] sm:$0xff] %vm319_vm2, %v657_v33  ;;  %v658_v9 = vmul.f32 %v2708_v38, %v3273_v56  ;;  %2721 = vpow2.f32 %v2031_v29  ;;  %v2684_v56 = vld [vmem:[%s4106_s2 + $0x20] sm:$0xff]   ;;  %v3376_v2 = vsel %vm99_vm0, %v803_v43, %v804_v44  ;;  %v2687_v33 = vld [vmem:[%s4106_s2 + $0x70] sm:$0xff]   ;;  %v2689_v44 = vld [vmem:[%s4106_s2 + $0x78] sm:$0xff]  }
 0x180   :  { %v2712_v40 = vpop.eup %2711  ;;  %718 = vst.msk [vmem:[#allocation2 + $0x41] sm:$0xff] %vm319_vm2, %v660_v0  ;;  %v613_v37 = vadd.f32 1.0, %v2710_v39  ;;  %2723 = vpow2.f32 %v2029_v35  ;;  %2101 = vmatpush3.bf16.msra.mxu1 %v2684_v56 }
 0x181   :  { %v2714_v11 = vpop.eup %2713  ;;  %716 = vst.msk [vmem:[#allocation2 + $0x21] sm:$0xff] %vm319_vm2, %v658_v9  ;;  %v616_v1 = vadd.f32 1.0, %v2712_v40  ;;  %v2208_v42 = vpop.f32.mrb[12].mxu0 }
 0x182   :  { %2725 = vrcp.f32 %v613_v37  ;;  %v614_v47 = vadd.f32 1.0, %v2714_v11  ;;  %v536_v48 = vmul.f32 %v2208_v42, %v3250_v21  ;;  %v500_v46 = vpop.f32.mrb[13].mxu0  ;;  %v2688_v37 = vld [vmem:[%s4106_s2 + $0x30] sm:$0xff]  }
 0x183   :  { %2727 = vrcp.f32 %v616_v1  ;;  %v534_v51 = vmul.f32 %v3250_v21, %v500_v46  ;;  %v2209_v52 = vpop.f32.mrb[14].mxu0 }
 0x184   :  { %2729 = vrcp.f32 %v614_v47  ;;  %v3364_v53 = vadd.f32 %v3255_v24, %v536_v48  ;;  %v537_v54 = vmul.f32 %v2209_v52, %v3250_v21  ;;  %v503_v57 = vpop.f32.mrb[15].mxu0 }
 0x185   :  { %v3368_v58 = vadd.f32 %v3255_v24, %v534_v51  ;;  %v535_v60 = vmul.f32 %v3250_v21, %v503_v57  ;;  %v3371_v61 = vld [vmem:[#allocation2 + $0x30] sm:$0xff]  ;;  %v3373_v63 = vld [vmem:[#allocation2 + $0x38] sm:$0x3]  ;;  %v2685_v21 = vld [vmem:[%s4106_s2 + $0x68] sm:$0xff]  }
 0x186   :  { %v2716_v3 = vpop.eup %2715  ;;  %v2034_v22 = vmul.f32 -1.442695, %v3364_v53  ;;  %v3381_v4 = vadd.f32 %v3255_v24, %v537_v54  ;;  %v909_v17 = vrot.slane %v3371_v61, 2  ;;  %v3394_v14 = vld [vmem:[#allocation2 + $0x10] sm:$0xff]  ;;  %v910_v16 = vrot.slane %v3373_v63, 2  ;;  %2102 = vmatprep.subr.bf16.mxu1 %v2685_v21 }
 0x187   :  { %v2718_v6 = vpop.eup %2717  ;;  %v619_v7 = vadd.f32 1.0, %v2716_v3  ;;  %v2032_v8 = vmul.f32 -1.442695, %v3368_v58  ;;  %v3390_v10 = vadd.f32 %v3255_v24, %v535_v60  ;;  %v3392_v12 = vld [vmem:[#allocation2 + $0x40] sm:$0xff]  ;;  %v2686_v24 = vld [vmem:[%s4106_s2 + $0x28] sm:$0xff]   ;;  %v806_v43 = vrot.slane %v3394_v14, 1 }
 0x188   :  { %v2720_v41 = vpop.eup %2719  ;;  %v663_v26 = vmul.f32 %v2718_v6, %v3289_v45  ;;  %2731 = vpow2.f32 %v2034_v22  ;;  %v2035_v15 = vmul.f32 -1.442695, %v3381_v4  ;;  %v2429_v19 = vpack.i.bf16 %v3392_v12, %v3371_v61  ;;  %v3401_v20 = vld [vmem:[#allocation2 + $0x20] sm:$0xff]  ;;  %v3403_v23 = vld [vmem:[#allocation2 + $0x28] sm:$0x3]  ;;  %2103 = vmatpush3.bf16.msra.mxu1 %v2686_v24  ;;  %v2690_v3 = vld [vmem:[%s4106_s2 + $0x38] sm:$0xff]  }
 0x189   :  { %v2722_v27 = vpop.eup %2721  ;;  %2733 = vrcp.f32 %v619_v7  ;;  %v617_v28 = vadd.f32 1.0, %v2720_v41  ;;  %v2033_v45 = vmul.f32 -1.442695, %v3390_v10  ;;  %v2434_v29 = vpack.i.bf16 %v3371_v61, %v3401_v20  ;;  %v3411_v32 = vld [vmem:[#allocation2 + $0x48] sm:$0x3]  ;;  %2104 = vmatprep.subr.bf16.mxu1 %v2687_v33 }
 0x18a   :  { %v2724_v35 = vpop.eup %2723  ;;  %721 = vst.msk [vmem:[#allocation2 + $0x71] sm:$0xff] %vm319_vm2, %v663_v26  ;;  %v620_v36 = vadd.f32 1.0, %v2722_v27  ;;  %2735 = vpow2.f32 %v2032_v8  ;;  %2430 = vrot.lane.b32.xlu1 %v2429_v19, %s2847_s4  ;;  %v2439_v38 = vpack.i.bf16 %v3401_v20, %v3394_v14  ;;  %v906_v0 = vrot.slane %v3401_v20, 2  ;;  %v734_v34 = vld [vmem:[#allocation2 + $0x18] sm:$0x3]  ;;  %v3474_v26 = vld [vmem:[#allocation2 + $0x90] sm:$0xff] }
 0x18b   :  { %2737 = vrcp.f32 %v617_v28  ;;  %v618_v39 = vadd.f32 1.0, %v2724_v35  ;;  %2435 = vrot.lane.b32.xlu0 %v2434_v29, %s2848_s11  ;;  %v907_v9 = vrot.slane %v3403_v23, 2  ;;  %v3424_v40 = vsel %vm899_vm6, %v909_v17, %v910_v16  ;;  %v3490_v35 = vld [vmem:[#allocation2 + $0x98] sm:$0x3] }
 0x18c   :  { %v2726_v11 = vpop.eup %2725  ;;  %2739 = vrcp.f32 %v620_v36  ;;  %v912_v1 = vrot.slane %v3392_v12, 2  ;;  %v913_v42 = vrot.slane %v3411_v32, 2  ;;  %v807_v46 = vrot.slane %v734_v34, 1  ;;  %2105 = vmatpush3.bf16.msra.mxu1 %v2688_v37 }
 0x18d   :  { %v2728_v56 = vpop.eup %2727  ;;  %v661_v47 = vmul.f32 %v2726_v11, %v3296_v49  ;;  %2741 = vrcp.f32 %v618_v39  ;;  %v3437_v48 = vsel %vm899_vm6, %v906_v0, %v907_v9  ;;  %2106 = vmatprep.subr.bf16.mxu1 %v2689_v44  ;;  %v904_v17 = vrot.slane %v734_v34, 2 }
 0x18e   :  { %v2730_v51 = vpop.eup %2729  ;;  %v664_v52 = vmul.f32 %v2728_v56, %v3304_v55  ;;  %2743 = vpow2.f32 %v2035_v15  ;;  %2440 = vrot.lane.b32.xlu1 %v2439_v38, %s2847_s4  ;;  %v1351_v54 = vpack.c.bf16 %v3424_v40, %v3437_v48  ;;  %v3444_v57 = vsel %vm899_vm6, %v912_v1, %v913_v42 }
 0x18f   :  { %719 = vst.msk [vmem:[#allocation2 + $0x51] sm:$0xff] %vm319_vm2, %v661_v47  ;;  %v662_v49 = vmul.f32 %v2730_v51, %v3307_v59  ;;  %2745 = vpow2.f32 %v2033_v45  ;;  %v2454_v60 = vpack.i.bf16 %v3444_v57, %v3424_v40  ;;  %v3451_v55 = vsel %vm99_vm0, %v806_v43, %v807_v46 }
 0x190   :  { %722 = vst.msk [vmem:[#allocation2 + $0x81] sm:$0xff] %vm319_vm2, %v664_v52  ;;  %2214 = vmatprep.mubr.msk.bf16.mxu0 %vm319_vm2, %v1351_v54  ;;  %v2444_v22 = vpack.i.bf16 %v3451_v55, %v3376_v2  ;;  %v903_v59 = vrot.slane %v3394_v14, 2  ;;  %v809_v21 = vrot.slane %v3401_v20, 1  ;;  %v902_v6 = vsel %vm899_vm6, %v900_v31, %v901_v5  ;;  %2107 = vmatpush3.bf16.msra.mxu1 %v2690_v3 }
 0x191   :  { %720 = vst.msk [vmem:[#allocation2 + $0x61] sm:$0xff] %vm319_vm2, %v662_v49  ;;  %2455 = vrot.lane.b32.xlu0 %v2454_v60, %s2843_s19  ;;  %v810_v7 = vrot.slane %v3403_v23, 1  ;;  %v812_v8 = vrot.slane %v3371_v61, 1  ;;  %v813_v2 = vrot.slane %v3373_v63, 1  ;;  %v3480_v5 = vld [vmem:[#allocation2 + $0x70] sm:$0xff]  ;;  %v1230_v33 = vrot.slane %v3474_v26, 2 }
 0x192   :  { %v2732_v16 = vpop.eup %2731  ;;  %2445 = vrot.lane.b32.xlu1 %v2444_v22, %s2843_s19  ;;  %v905_v41 = vsel %vm899_vm6, %v903_v59, %v904_v17  ;;  %v3482_v23 = vld [vmem:[#allocation2 + $0x78] sm:$0x3]  ;;  %v921_v39 = vrot.slane %v3480_v5, 2 }
 0x193   :  { %v2734_v15 = vpop.eup %2733  ;;  %v623_v50 = vadd.f32 1.0, %v2732_v16  ;;  %v2459_v19 = vpack.i.bf16 %v3437_v48, %v905_v41  ;;  %v3478_v31 = vsel %vm99_vm0, %v809_v21, %v810_v7  ;;  %v2449_v27 = vpack.i.bf16 %v905_v41, %v902_v6 }
 0x194   :  { %v2736_v63 = vpop.eup %2735  ;;  %v667_v24 = vmul.f32 %v2734_v15, %v3321_v13  ;;  %v3487_v29 = vsel %vm99_vm0, %v812_v8, %v813_v2  ;;  %v922_v9 = vrot.slane %v3482_v23, 2  ;;  %v2474_v8 = vpack.i.bf16 %v3424_v40, %v3437_v48 }
 0x195   :  { %v2738_v28 = vpop.eup %2737  ;;  %2747 = vrcp.f32 %v623_v50  ;;  %v621_v45 = vadd.f32 1.0, %v2736_v63  ;;  %2460 = vrot.lane.b32.xlu0 %v2459_v19, %s2843_s19  ;;  %v2464_v34 = vpack.i.bf16 %v3487_v29, %v3478_v31 }
 0x196   :  { %v2740_v36 = vpop.eup %2739  ;;  %725 = vst.msk [vmem:[#allocation2 + $0xd1] sm:$0xff] %vm319_vm2, %v667_v24  ;;  %v665_v38 = vmul.f32 %v2738_v28, %v3325_v18  ;;  %v3494_v0 = vld [vmem:[#allocation2 + $0x50] sm:$0xff]  ;;  %v3496_v13 = vld [vmem:[#allocation2 + $0x58] sm:$0x3]  ;;  %2450 = vrot.lane.b32.xlu1 %v2449_v27, %s2848_s11  ;;  %v3529_v22 = vsel %vm899_vm6, %v921_v39, %v922_v9 }
 0x197   :  { %v2742_v37 = vpop.eup %2741  ;;  %v668_v11 = vmul.f32 %v2740_v36, %v3330_v62  ;;  %2749 = vrcp.f32 %v621_v45  ;;  %v915_v1 = vrot.slane %v3494_v0, 2  ;;  %v916_v18 = vrot.slane %v3496_v13, 2  ;;  %v3506_v42 = vld [vmem:[#allocation2 + $0x80] sm:$0xff]  ;;  %v3514_v46 = vld [vmem:[#allocation2 + $0x88] sm:$0x3] }
 0x198   :  { %v2744_v43 = vpop.eup %2743  ;;  %723 = vst.msk [vmem:[#allocation2 + $0xb1] sm:$0xff] %vm319_vm2, %v665_v38  ;;  %v666_v44 = vmul.f32 %v2742_v37, %v3334_v25  ;;  %v3510_v56 = vld [vmem:[#allocation2 + $0x60] sm:$0xff]  ;;  %v3512_v47 = vld [vmem:[#allocation2 + $0x68] sm:$0x3]  ;;  %v1231_v62 = vrot.slane %v3490_v35, 2  ;;  %v2479_v59 = vpack.i.bf16 %v3494_v0, %v3392_v12  ;;  %v1070_v21 = vrot.slane %v3506_v42, 2 }
 0x199   :  { %v2746_v51 = vpop.eup %2745  ;;  %726 = vst.msk [vmem:[#allocation2 + $0xe1] sm:$0xff] %vm319_vm2, %v668_v11  ;;  %v624_v52 = vadd.f32 1.0, %v2744_v43  ;;  %v3519_v54 = vsel %vm899_vm6, %v915_v1, %v916_v18  ;;  %2465 = vrot.lane.b32.xlu0 %v2464_v34, %s2847_s4  ;;  %v918_v49 = vrot.slane %v3510_v56, 2  ;;  %v919_v25 = vrot.slane %v3512_v47, 2 }
 0x19a   :  { %724 = vst.msk [vmem:[#allocation2 + $0xc1] sm:$0xff] %vm319_vm2, %v666_v44  ;;  %v622_v60 = vadd.f32 1.0, %v2746_v51  ;;  %v1354_v3 = vpack.c.bf16 %v3519_v54, %v3444_v57  ;;  %2470 = vrot.lane.b32.xlu1 %v2464_v34, %s2843_s19  ;;  %v1071_v6 = vrot.slane %v3514_v46, 2  ;;  %v1232_v41 = vsel %vm899_vm6, %v1230_v33, %v1231_v62 }
 0x19b   :  { %2751 = vrcp.f32 %v624_v52  ;;  %v3534_v17 = vsel %vm899_vm6, %v918_v49, %v919_v25  ;;  %v2484_v50 = vpack.i.bf16 %v3474_v26, %v3506_v42  ;;  %v2489_v40 = vpack.i.bf16 %v3506_v42, %v3480_v5 }
 0x19c   :  { %2753 = vrcp.f32 %v622_v60  ;;  %2215 = vmatmul.mubr.msk.bf16.vlgmr.msra.gmra.mrb[16].mxu0 %vm319_vm2, %v1354_v3  ;;  %v1357_v7 = vpack.c.bf16 %v3529_v22, %v3534_v17  ;;  %v3554_v19 = vsel %vm899_vm6, %v1070_v21, %v1071_v6  ;;  %v818_v48 = vrot.slane %v3494_v0, 1 }
 0x19d   :  { %2480 = vrot.lane.b32.xlu0 %v2479_v59, %s2848_s11  ;;  %v3544_v2 = vld [vmem:[#allocation2 + $0xd0] sm:$0xff]  ;;  %v3546_v16 = vld [vmem:[#allocation2 + $0xd8] sm:$0x3]  ;;  %v819_v28 = vrot.slane %v3496_v13, 1  ;;  %v815_v38 = vrot.slane %v3392_v12, 1  ;;  %v816_v34 = vrot.slane %v3411_v32, 1  ;;  %v1360_v39 = vpack.c.bf16 %v1232_v41, %v3554_v19 }
 0x19e   :  { %2218 = vmatprep.mubr.msk.bf16.mxu0 %vm319_vm2, %v1357_v7  ;;  %2475 = vrot.lane.b32.xlu1 %v2474_v8, %s2848_s11  ;;  %v933_v24 = vrot.slane %v3544_v2, 2  ;;  %v934_v27 = vrot.slane %v3546_v16, 2  ;;  %v2494_v37 = vpack.i.bf16 %v3480_v5, %v3510_v56  ;;  %v2499_v32 = vpack.i.bf16 %v3510_v56, %v3494_v0 }
 0x19f   :  { %v2748_v15 = vpop.eup %2747  ;;  %v3589_v1 = vsel %vm99_vm0, %v818_v48, %v819_v28  ;;  %v3597_v51 = vsel %vm99_vm0, %v815_v38, %v816_v34  ;;  %v1176_v49 = vrot.slane %v3474_v26, 1  ;;  %v1177_v60 = vrot.slane %v3490_v35, 1 }
 0x1a0   :  { %v671_v63 = vmul.f32 %v2748_v15, %v3364_v53  ;;  %v3586_v11 = vsel %vm899_vm6, %v933_v24, %v934_v27  ;;  %v2504_v25 = vpack.i.bf16 %v3589_v1, %v3597_v51  ;;  %v3605_v3 = vld [vmem:[#allocation2 + $0xe0] sm:$0xff]  ;;  %v3607_v59 = vld [vmem:[#allocation2 + $0xe8] sm:$0x3]  ;;  %v1049_v21 = vrot.slane %v3514_v46, 1  ;;  %v3645_v27 = vld [vmem:[#allocation2 + $0x138] sm:$0x3] }
 0x1a1   :  { %v2750_v45 = vpop.eup %2749  ;;  %2485 = vrot.lane.b32.xlu0 %v2484_v50, %s2848_s11  ;;  %v3564_v33 = vld [vmem:[#allocation2 + $0xc0] sm:$0xff]  ;;  %v3566_v36 = vld [vmem:[#allocation2 + $0xc8] sm:$0x3]  ;;  %v822_v26 = vrot.slane %v3512_v47, 1  ;;  %v936_v35 = vrot.slane %v3605_v3, 2  ;;  %v937_v6 = vrot.slane %v3607_v59, 2  ;;  %v2519_v46 = vpack.i.bf16 %v3554_v19, %v3529_v22 }
 0x1a2   :  { %729 = vst.msk [vmem:[#allocation2 + $0x111] sm:$0xff] %vm319_vm2, %v671_v63  ;;  %v669_v53 = vmul.f32 %v2750_v45, %v3368_v58  ;;  %2490 = vrot.lane.b32.xlu1 %v2489_v40, %s2847_s4  ;;  %v930_v13 = vrot.slane %v3564_v33, 2  ;;  %v931_v9 = vrot.slane %v3566_v36, 2  ;;  %v824_v7 = vrot.slane %v3480_v5, 1  ;;  %v3628_v47 = vld [vmem:[#allocation2 + $0x130] sm:$0xff] }
 0x1a3   :  { %v1178_v8 = vsel %vm99_vm0, %v1176_v49, %v1177_v60  ;;  %v2514_v50 = vpack.i.bf16 %v3519_v54, %v3444_v57  ;;  %v3649_v57 = vsel %vm899_vm6, %v936_v35, %v937_v6  ;;  %v1233_v38 = vrot.slane %v3628_v47, 2 }
 0x1a4   :  { %727 = vst.msk [vmem:[#allocation2 + $0xf1] sm:$0xff] %vm319_vm2, %v669_v53  ;;  %2219 = vmatmul.mubr.msk.bf16.gmra.mrb[20].mxu0 %vm319_vm2, %v1360_v39  ;;  %v3583_v58 = vsel %vm899_vm6, %v930_v13, %v931_v9 }
 0x1a5   :  { %v2752_v18 = vpop.eup %2751  ;;  %2495 = vrot.lane.b32.xlu0 %v2494_v37, %s2848_s11  ;;  %v1363_v43 = vpack.c.bf16 %v3586_v11, %v3583_v58 }
 0x1a6   :  { %v2754_v44 = vpop.eup %2753  ;;  %v672_v62 = vmul.f32 %v2752_v18, %v3381_v4  ;;  %2500 = vrot.lane.b32.xlu1 %v2499_v32, %s2847_s4  ;;  %v1048_v4 = vrot.slane %v3506_v42, 1  ;;  %v825_v42 = vrot.slane %v3482_v23, 1 }
 0x1a7   :  { %v670_v52 = vmul.f32 %v2754_v44, %v3390_v10  ;;  %2222 = vmatprep.mubr.msk.bf16.mxu0 %vm319_vm2, %v1363_v43  ;;  %v821_v10 = vrot.slane %v3510_v56, 1 }
 0x1a8   :  { %730 = vst.msk [vmem:[#allocation2 + $0x121] sm:$0xff] %vm319_vm2, %v672_v62  ;;  %v3633_v40 = vsel %vm99_vm0, %v1048_v4, %v1049_v21  ;;  %v3655_v45 = vsel %vm99_vm0, %v824_v7, %v825_v42  ;;  %v2529_v21 = vpack.i.bf16 %v3534_v17, %v3519_v54  ;;  %v3698_v7 = vld [vmem:[#allocation2 + $0xa0] sm:$0xff]  ;;  %v3702_v54 = vld [vmem:[#allocation2 + $0xb0] sm:$0xff]  ;;  %v752_v42 = vld [vmem:[#allocation2 + $0xa8] sm:$0x3] }
 0x1a9   :  { %728 = vst.msk [vmem:[#allocation2 + $0x101] sm:$0xff] %vm319_vm2, %v670_v52  ;;  %2505 = vrot.lane.b32.xlu0 %v2504_v25, %s2847_s4  ;;  %v3637_v63 = vld [vmem:[#allocation2 + $0x110] sm:$0xff]  ;;  %v3639_v19 = vld [vmem:[#allocation2 + $0x118] sm:$0x3]  ;;  %v3643_v24 = vsel %vm99_vm0, %v821_v10, %v822_v26  ;;  %v2524_v34 = vpack.i.bf16 %v1178_v8, %v3633_v40  ;;  %v1234_v52 = vrot.slane %v3645_v27, 2  ;;  %v2544_v26 = vpack.i.bf16 %v3529_v22, %v3534_v17 }
 0x1aa   :  { %2510 = vrot.lane.b32.xlu1 %v2504_v25, %s2843_s19  ;;  %v945_v39 = vrot.slane %v3637_v63, 2  ;;  %v946_v13 = vrot.slane %v3639_v19, 2  ;;  %v2539_v32 = vpack.i.bf16 %v3655_v45, %v3643_v24  ;;  %v2549_v22 = vpack.i.bf16 %v3605_v3, %v3544_v2 }
 0x1ab   :  { %v3624_v41 = vld [vmem:[#allocation2 + $0xf0] sm:$0xff]  ;;  %v3626_v15 = vld [vmem:[#allocation2 + $0xf8] sm:$0x3]  ;;  %v1235_v6 = vsel %vm899_vm6, %v1233_v38, %v1234_v52  ;;  %v827_v17 = vrot.slane %v3698_v7, 1  ;;  %v2554_v38 = vpack.i.bf16 %v3544_v2, %v3564_v33  ;;  %v2574_v52 = vpack.i.bf16 %v3649_v57, %v3586_v11 }
 0x1ac   :  { %v939_v48 = vrot.slane %v3624_v41, 2  ;;  %v940_v23 = vrot.slane %v3626_v15, 2  ;;  %v3685_v4 = vsel %vm899_vm6, %v945_v39, %v946_v13  ;;  %v925_v39 = vrot.slane %v752_v42, 2 }
 0x1ad   :  { %2520 = vrot.lane.b32.xlu0 %v2519_v46, %s2843_s19  ;;  %v754_v46 = vld [vmem:[#allocation2 + $0xb8] sm:$0x3] }
 0x1ae   :  { %2515 = vrot.lane.b32.xlu1 %v2514_v50, %s2848_s11  ;;  %v3652_v28 = vsel %vm899_vm6, %v939_v48, %v940_v23  ;;  %v828_v50 = vrot.slane %v752_v42, 1  ;;  %v830_v48 = vrot.slane %v3702_v54, 1  ;;  %v831_v23 = vrot.slane %v754_v46, 1 }
 0x1af   :  { %v1366_v53 = vpack.c.bf16 %v3652_v28, %v3649_v57  ;;  %v3663_v9 = vld [vmem:[#allocation2 + $0x120] sm:$0xff]  ;;  %v3665_v37 = vld [vmem:[#allocation2 + $0x128] sm:$0x3]  ;;  %v837_v42 = vrot.slane %v3546_v16, 1  ;;  %v2599_v16 = vpack.i.bf16 %v3624_v41, %v3605_v3 }
 0x1b0   :  { %v3669_v18 = vld [vmem:[#allocation2 + $0x100] sm:$0xff]  ;;  %v3671_v43 = vld [vmem:[#allocation2 + $0x108] sm:$0x3]  ;;  %v1073_v44 = vrot.slane %v3663_v9, 2  ;;  %v1074_v62 = vrot.slane %v3665_v37, 2  ;;  %v829_v13 = vsel %vm99_vm0, %v827_v17, %v828_v50  ;;  %v2594_v50 = vpack.i.bf16 %v3586_v11, %v3583_v58 }
 0x1b1   :  { %2525 = vrot.lane.b32.xlu0 %v2524_v34, %s2847_s4  ;;  %2223 = vmatmul.mubr.msk.bf16.gmra.mrb[24].mxu0 %vm319_vm2, %v1366_v53  ;;  %v942_v49 = vrot.slane %v3669_v18, 2  ;;  %v943_v25 = vrot.slane %v3671_v43, 2  ;;  %v2559_v34 = vpack.i.bf16 %v3564_v33, %v3702_v54  ;;  %v924_v53 = vrot.slane %v3698_v7, 2 }
 0x1b2   :  { %2540 = vrot.lane.b32.xlu1 %v2539_v32, %s2843_s19  ;;  %v3694_v35 = vsel %vm899_vm6, %v1073_v44, %v1074_v62  ;;  %v927_v44 = vrot.slane %v3702_v54, 2  ;;  %v928_v62 = vrot.slane %v754_v46, 2 }
 0x1b3   :  { %v3682_v60 = vsel %vm899_vm6, %v942_v49, %v943_v25  ;;  %v1372_v8 = vpack.c.bf16 %v1235_v6, %v3694_v35  ;;  %v833_v25 = vrot.slane %v3564_v33, 1  ;;  %v836_v6 = vrot.slane %v3544_v2, 1 }
 0x1b4   :  { %v1369_v10 = vpack.c.bf16 %v3685_v4, %v3682_v60 }
 0x1b5   :  { %2530 = vrot.lane.b32.xlu0 %v2529_v21, %s2843_s19  ;;  %v834_v21 = vrot.slane %v3566_v36, 1  ;;  %v3742_v36 = vsel %vm99_vm0, %v836_v6, %v837_v42  ;;  %v2644_v6 = vpack.i.bf16 %v3628_v47, %v3663_v9  ;;  %v2664_v42 = vpack.i.bf16 %v3663_v9, %v3637_v63 }
 0x1b6   :  { %2226 = vmatprep.mubr.msk.bf16.mxu0 %vm319_vm2, %v1369_v10  ;;  %2545 = vrot.lane.b32.xlu1 %v2544_v26, %s2848_s11  ;;  %v929_v10 = vsel %vm899_vm6, %v927_v44, %v928_v62  ;;  %v926_v26 = vsel %vm899_vm6, %v924_v53, %v925_v39  ;;  %v2604_v53 = vpack.i.bf16 %v3637_v63, %v3669_v18  ;;  %v848_v62 = vrot.slane %v3637_v63, 1 }
 0x1b7   :  { %v2579_v46 = vpack.i.bf16 %v3583_v58, %v929_v10  ;;  %v2609_v39 = vpack.i.bf16 %v3669_v18, %v3624_v41  ;;  %v2629_v44 = vpack.i.bf16 %v3694_v35, %v3685_v4 }
 0x1b9   :  { %2535 = vrot.lane.b32.xlu0 %v2539_v32, %s2847_s4  ;;  %2227 = vmatmul.mubr.msk.bf16.gmra.mrb[28].mxu0 %vm319_vm2, %v1372_v8  ;;  %v3720_v32 = vsel %vm99_vm0, %v830_v48, %v831_v23  ;;  %v2569_v8 = vpack.i.bf16 %v929_v10, %v926_v26  ;;  %v842_v48 = vrot.slane %v3624_v41, 1  ;;  %v843_v23 = vrot.slane %v3626_v15, 1 }
 0x1ba   :  { %2550 = vrot.lane.b32.xlu1 %v2549_v22, %s2847_s4  ;;  %v2564_v49 = vpack.i.bf16 %v3720_v32, %v829_v13  ;;  %v3737_v22 = vsel %vm99_vm0, %v833_v25, %v834_v21  ;;  %v846_v13 = vrot.slane %v3671_v43, 1  ;;  %v2634_v43 = vpack.i.bf16 %v3682_v60, %v3652_v28 }
 0x1bb   :  { %v2584_v17 = vpack.i.bf16 %v3742_v36, %v3737_v22  ;;  %v3763_v58 = vsel %vm99_vm0, %v842_v48, %v843_v23  ;;  %v1051_v10 = vrot.slane %v3663_v9, 1  ;;  %v1052_v26 = vrot.slane %v3665_v37, 1 }
 0x1bd   :  { %2555 = vrot.lane.b32.xlu0 %v2554_v38, %s2848_s11  ;;  %v839_v38 = vrot.slane %v3605_v3, 1 }
 0x1be   :  { %2560 = vrot.lane.b32.xlu1 %v2559_v34, %s2847_s4  ;;  %v840_v34 = vrot.slane %v3607_v59, 1  ;;  %v845_v59 = vrot.slane %v3669_v18, 1 }
 0x1c0   :  { %v3768_v11 = vsel %vm99_vm0, %v839_v38, %v840_v34  ;;  %v3784_v25 = vsel %vm99_vm0, %v845_v59, %v846_v13 }
 0x1c1   :  { %2575 = vrot.lane.b32.xlu0 %v2574_v52, %s2843_s19  ;;  %v2614_v15 = vpack.i.bf16 %v3763_v58, %v3768_v11  ;;  %v849_v52 = vrot.slane %v3639_v19, 1  ;;  %v1179_v19 = vrot.slane %v3628_v47, 1 }
 0x1c2   :  { %2565 = vrot.lane.b32.xlu1 %v2564_v49, %s2843_s19  ;;  %v2624_v49 = vpack.i.bf16 %v3652_v28, %v3649_v57  ;;  %v2654_v57 = vpack.i.bf16 %v3685_v4, %v3682_v60  ;;  %v1180_v28 = vrot.slane %v3645_v27, 1 }
 0x1c3   :  { %v3790_v21 = vsel %vm99_vm0, %v848_v62, %v849_v52 }
 0x1c4   :  { %v2649_v35 = vpack.i.bf16 %v3790_v21, %v3784_v25  ;;  %v1181_v60 = vsel %vm99_vm0, %v1179_v19, %v1180_v28 }
 0x1c5   :  { %2580 = vrot.lane.b32.xlu0 %v2579_v46, %s2843_s19  ;;  %v3809_v46 = vsel %vm99_vm0, %v1051_v10, %v1052_v26 }
 0x1c6   :  { %2570 = vrot.lane.b32.xlu1 %v2569_v8, %s2848_s11  ;;  %v2659_v27 = vpack.i.bf16 %v1181_v60, %v3809_v46 }
 0x1c9   :  { %2585 = vrot.lane.b32.xlu0 %v2584_v17, %s2847_s4 }
 0x1ca   :  { %2590 = vrot.lane.b32.xlu1 %v2584_v17, %s2843_s19 }
 0x1cd   :  { %2600 = vrot.lane.b32.xlu0 %v2599_v16, %s2848_s11 }
 0x1ce   :  { %2595 = vrot.lane.b32.xlu1 %v2594_v50, %s2848_s11 }
 0x1d1   :  { %2605 = vrot.lane.b32.xlu0 %v2604_v53, %s2848_s11 }
 0x1d2   :  { %2610 = vrot.lane.b32.xlu1 %v2609_v39, %s2847_s4 }
 0x1d5   :  { %2615 = vrot.lane.b32.xlu0 %v2614_v15, %s2847_s4 }
 0x1d6   :  { %2620 = vrot.lane.b32.xlu1 %v2614_v15, %s2843_s19 }
 0x1d9   :  { %2630 = vrot.lane.b32.xlu0 %v2629_v44, %s2843_s19 }
 0x1da   :  { %2625 = vrot.lane.b32.xlu1 %v2624_v49, %s2848_s11 }
 0x1dd   :  { %2635 = vrot.lane.b32.xlu0 %v2634_v43, %s2843_s19 }
 0x1de   :  { %2650 = vrot.lane.b32.xlu1 %v2649_v35, %s2843_s19 }
 0x1e1   :  { %2640 = vrot.lane.b32.xlu0 %v2649_v35, %s2847_s4 }
 0x1e2   :  { %2655 = vrot.lane.b32.xlu1 %v2654_v57, %s2848_s11 }
 0x1e5   :  { %2645 = vrot.lane.b32.xlu0 %v2644_v6, %s2848_s11 }
 0x1e6   :  { %2665 = vrot.lane.b32.xlu1 %v2664_v42, %s2847_s4 }
 0x1e9   :  { %2660 = vrot.lane.b32.xlu0 %v2659_v27, %s2847_s4 }
 0x1fc   :  { %v3816_v37 = vpop.permute.xlu1 %2430 }
 0x1fd   :  { %v2436_v4 = vpop.permute.xlu0 %2435 }
 0x1fe   :  { %v2438_v52 = vunpack.i.h.bf16 %v2436_v4  ;;  %v2437_v49 = vunpack.i.l.bf16 %v2436_v4 }
 0x200   :  { %v2441_v47 = vpop.permute.xlu1 %2440 }
 0x201   :  { %v2443_v34 = vunpack.i.h.bf16 %v2441_v47  ;;  %v2442_v53 = vunpack.i.l.bf16 %v2441_v47 }
 0x203   :  { %v2456_v8 = vpop.permute.xlu0 %2455 }
 0x204   :  { %v2446_v17 = vpop.permute.xlu1 %2445 }
 0x205   :  { %v2448_v9 = vunpack.i.h.bf16 %v2446_v17  ;;  %v2447_v16 = vunpack.i.l.bf16 %v2446_v17 }
 0x207   :  { %v2461_v50 = vpop.permute.xlu0 %2460  ;;  %v1253_v59 = vsel %vm319_vm2, %v3394_v14, %v2448_v9  ;;  %v1252_v13 = vsel %vm319_vm2, %v3345_v30, %v2447_v16 }
 0x208   :  { %v2463_v48 = vunpack.i.h.bf16 %v2461_v50  ;;  %v2462_v23 = vunpack.i.l.bf16 %v2461_v50  ;;  %v2451_v38 = vpop.permute.xlu1 %2450 }
 0x209   :  { %v2453_v39 = vunpack.i.h.bf16 %v2451_v38  ;;  %v2452_v15 = vunpack.i.l.bf16 %v2451_v38  ;;  %v2458_v38 = vunpack.i.h.bf16 %v2456_v8 }
 0x20a   :  { %v1301_v44 = vsel %vm319_vm2, %v3451_v55, %v2462_v23  ;;  %v1302_v62 = vsel %vm319_vm2, %v3478_v31, %v2463_v48 }
 0x20b   :  { %v1268_v43 = vsel %vm393_vm4, %v1252_v13, %v2452_v15  ;;  %v1269_v35 = vsel %vm393_vm4, %v1253_v59, %v2453_v39  ;;  %v2466_v19 = vpop.permute.xlu0 %2465  ;;  %v1317_v28 = vsel %vm393_vm4, %v1301_v44, %v2437_v49  ;;  %v1318_v55 = vsel %vm393_vm4, %v1302_v62, %v2438_v52 }
 0x20c   :  { %v2468_v57 = vunpack.i.h.bf16 %v2466_v19  ;;  %v2467_v10 = vunpack.i.l.bf16 %v2466_v19  ;;  %v2471_v26 = vpop.permute.xlu1 %2470  ;;  %v1285_v14 = vsel %vm1284_vm7, %v1268_v43, %v2442_v53  ;;  %v1286_v30 = vsel %vm1284_vm7, %v1269_v35, %v2443_v34 }
 0x20d   :  { %v1349_v42 = vpack.c.bf16 %v1286_v30, %v1285_v14  ;;  %v2473_v9 = vunpack.i.h.bf16 %v2471_v26  ;;  %v2472_v16 = vunpack.i.l.bf16 %v2471_v26  ;;  %v2457_v34 = vunpack.i.l.bf16 %v2456_v8 }
 0x20e   :  { %v1333_v31 = vsel %vm1284_vm7, %v1317_v28, %v2467_v10  ;;  %v1334_v6 = vsel %vm1284_vm7, %v1318_v55, %v2468_v57  ;;  %v2433_v52 = vunpack.i.h.bf16 %v3816_v37  ;;  %v2432_v49 = vunpack.i.l.bf16 %v3816_v37 }
 0x20f   :  { %v2481_v60 = vpop.permute.xlu0 %2480  ;;  %v1350_v27 = vpack.c.bf16 %v1334_v6, %v1333_v31  ;;  %v1255_v39 = vsel %vm319_vm2, %v3371_v61, %v2473_v9  ;;  %v1254_v15 = vsel %vm319_vm2, %v3401_v20, %v2472_v16  ;;  %v1304_v8 = vsel %vm319_vm2, %v3597_v51, %v2458_v38 }
 0x210   :  { %v2476_v4 = vpop.permute.xlu1 %2475  ;;  %v2483_v59 = vunpack.i.h.bf16 %v2481_v60  ;;  %v2482_v13 = vunpack.i.l.bf16 %v2481_v60  ;;  %v1303_v61 = vsel %vm319_vm2, %v3487_v29, %v2457_v34 }
 0x211   :  { %1573 = vmatprep.mubr.bf16.mxu1 %v1350_v27  ;;  %v2478_v50 = vunpack.i.h.bf16 %v2476_v4  ;;  %v2477_v48 = vunpack.i.l.bf16 %v2476_v4 }
 0x212   :  { %1574 = vmatmul.mubr.bf16.vlgmr.msra.gmra.mrb[0].mxu1 %v1349_v42  ;;  %v1320_v57 = vsel %vm393_vm4, %v1304_v8, %v2483_v59  ;;  %v1319_v10 = vsel %vm393_vm4, %v1303_v61, %v2482_v13 }
 0x213   :  { %v3834_v47 = vpop.permute.xlu0 %2485  ;;  %v1270_v44 = vsel %vm393_vm4, %v1254_v15, %v2477_v48  ;;  %v1271_v62 = vsel %vm393_vm4, %v1255_v39, %v2478_v50 }
 0x214   :  { %v3836_v17 = vpop.permute.xlu1 %2490  ;;  %v1287_v26 = vsel %vm1284_vm7, %v1270_v44, %v2432_v49  ;;  %v1288_v14 = vsel %vm1284_vm7, %v1271_v62, %v2433_v52  ;;  %v2488_v50 = vunpack.i.h.bf16 %v3834_v47  ;;  %v2487_v48 = vunpack.i.l.bf16 %v3834_v47 }
 0x215   :  { %v1352_v31 = vpack.c.bf16 %v1288_v14, %v1287_v26 }
 0x217   :  { %v3838_v23 = vpop.permute.xlu0 %2495 }
 0x218   :  { %v2501_v53 = vpop.permute.xlu1 %2500  ;;  %v2497_v61 = vunpack.i.l.bf16 %v3838_v23 }
 0x219   :  { %v2503_v49 = vunpack.i.h.bf16 %v2501_v53 }
 0x21b   :  { %v2506_v43 = vpop.permute.xlu0 %2505 }
 0x21c   :  { %v2508_v35 = vunpack.i.h.bf16 %v2506_v43  ;;  %v2507_v19 = vunpack.i.l.bf16 %v2506_v43  ;;  %v2511_v20 = vpop.permute.xlu1 %2510  ;;  %v2502_v43 = vunpack.i.l.bf16 %v2501_v53 }
 0x21d   :  { %v2513_v29 = vunpack.i.h.bf16 %v2511_v20  ;;  %v2512_v6 = vunpack.i.l.bf16 %v2511_v20 }
 0x21e   :  { %v1335_v37 = vsel %vm1284_vm7, %v1319_v10, %v2507_v19  ;;  %v1336_v30 = vsel %vm1284_vm7, %v1320_v57, %v2508_v35 }
 0x21f   :  { %v2521_v28 = vpop.permute.xlu0 %2520  ;;  %v1353_v51 = vpack.c.bf16 %v1336_v30, %v1335_v37  ;;  %v1257_v38 = vsel %vm319_vm2, %v3494_v0, %v2513_v29  ;;  %v1256_v34 = vsel %vm319_vm2, %v3392_v12, %v2512_v6  ;;  %v2498_v12 = vunpack.i.h.bf16 %v3838_v23 }
 0x220   :  { %v2516_v55 = vpop.permute.xlu1 %2515  ;;  %v2523_v42 = vunpack.i.h.bf16 %v2521_v28  ;;  %v2522_v60 = vunpack.i.l.bf16 %v2521_v28 }
 0x221   :  { %1581 = vmatprep.mubr.bf16.mxu1 %v1353_v51  ;;  %v2518_v4 = vunpack.i.h.bf16 %v2516_v55  ;;  %v2517_v9 = vunpack.i.l.bf16 %v2516_v55 }
 0x222   :  { %1582 = vmatmul.mubr.bf16.gmra.mrb[4].mxu1 %v1352_v31  ;;  %v1308_v39 = vsel %vm319_vm2, %v3633_v40, %v2523_v42  ;;  %v1307_v15 = vsel %vm319_vm2, %v3655_v45, %v2522_v60 }
 0x223   :  { %v2526_v27 = vpop.permute.xlu0 %2525  ;;  %v1272_v13 = vsel %vm393_vm4, %v1256_v34, %v2517_v9  ;;  %v1273_v44 = vsel %vm393_vm4, %v1257_v38, %v2518_v4  ;;  %v1323_v57 = vsel %vm393_vm4, %v1307_v15, %v2487_v48  ;;  %v1324_v53 = vsel %vm393_vm4, %v1308_v39, %v2488_v50 }
 0x224   :  { %v2541_v16 = vpop.permute.xlu1 %2540  ;;  %v2528_v0 = vunpack.i.h.bf16 %v2526_v27  ;;  %v2527_v8 = vunpack.i.l.bf16 %v2526_v27  ;;  %v1289_v19 = vsel %vm1284_vm7, %v1272_v13, %v2502_v43  ;;  %v1290_v20 = vsel %vm1284_vm7, %v1273_v44, %v2503_v49 }
 0x225   :  { %v2543_v10 = vunpack.i.h.bf16 %v2541_v16  ;;  %v2542_v26 = vunpack.i.l.bf16 %v2541_v16  ;;  %v1355_v60 = vpack.c.bf16 %v1290_v20, %v1289_v19  ;;  %v2493_v38 = vunpack.i.h.bf16 %v3836_v17 }
 0x226   :  { %v1340_v28 = vsel %vm1284_vm7, %v1324_v53, %v2528_v0  ;;  %v2492_v34 = vunpack.i.l.bf16 %v3836_v17 }
 0x227   :  { %v2531_v59 = vpop.permute.xlu0 %2530  ;;  %v1259_v4 = vsel %vm319_vm2, %v3480_v5, %v2543_v10  ;;  %v1258_v9 = vsel %vm319_vm2, %v3510_v56, %v2542_v26 }
 0x228   :  { %v2533_v62 = vunpack.i.h.bf16 %v2531_v59  ;;  %v2532_v52 = vunpack.i.l.bf16 %v2531_v59  ;;  %v2546_v47 = vpop.permute.xlu1 %2545 }
 0x229   :  { %v2548_v51 = vunpack.i.h.bf16 %v2546_v47  ;;  %v2547_v55 = vunpack.i.l.bf16 %v2546_v47 }
 0x22a   :  { %v1305_v40 = vsel %vm319_vm2, %v3589_v1, %v2532_v52  ;;  %v1306_v45 = vsel %vm319_vm2, %v3643_v24, %v2533_v62  ;;  %v1339_v24 = vsel %vm1284_vm7, %v1323_v57, %v2527_v8 }
 0x22b   :  { %v2536_v35 = vpop.permute.xlu0 %2535  ;;  %v1321_v1 = vsel %vm393_vm4, %v1305_v40, %v2497_v61  ;;  %v1322_v30 = vsel %vm393_vm4, %v1306_v45, %v2498_v12  ;;  %v1359_v16 = vpack.c.bf16 %v1340_v28, %v1339_v24  ;;  %v1274_v50 = vsel %vm393_vm4, %v1258_v9, %v2547_v55 }
 0x22c   :  { %v2538_v14 = vunpack.i.h.bf16 %v2536_v35  ;;  %v2537_v37 = vunpack.i.l.bf16 %v2536_v35  ;;  %v3880_v23 = vpop.permute.xlu1 %2550  ;;  %v1275_v48 = vsel %vm393_vm4, %v1259_v4, %v2548_v51  ;;  %v1291_v59 = vsel %vm1284_vm7, %v1274_v50, %v2492_v34 }
 0x22d   :  { %v1292_v5 = vsel %vm1284_vm7, %v1275_v48, %v2493_v38 }
 0x22e   :  { %v1337_v31 = vsel %vm1284_vm7, %v1321_v1, %v2537_v37  ;;  %v1338_v29 = vsel %vm1284_vm7, %v1322_v30, %v2538_v14  ;;  %v1358_v47 = vpack.c.bf16 %v1292_v5, %v1291_v59  ;;  %v2552_v59 = vunpack.i.l.bf16 %v3880_v23 }
 0x22f   :  { %v2556_v6 = vpop.permute.xlu0 %2555  ;;  %v1356_v42 = vpack.c.bf16 %v1338_v29, %v1337_v31 }
 0x230   :  { %v2561_v27 = vpop.permute.xlu1 %2560  ;;  %v2558_v35 = vunpack.i.h.bf16 %v2556_v6  ;;  %v2557_v19 = vunpack.i.l.bf16 %v2556_v6 }
 0x231   :  { %1589 = vmatprep.mubr.bf16.mxu1 %v1356_v42  ;;  %v2563_v43 = vunpack.i.h.bf16 %v2561_v27  ;;  %v2562_v0 = vunpack.i.l.bf16 %v2561_v27 }
 0x232   :  { %1590 = vmatmul.mubr.bf16.gmra.mrb[8].mxu1 %v1355_v60 }
 0x233   :  { %1597 = vmatprep.mubr.bf16.mxu1 %v1359_v16  ;;  %v2576_v39 = vpop.permute.xlu0 %2575 }
 0x234   :  { %v2566_v15 = vpop.permute.xlu1 %2565  ;;  %v2578_v60 = vunpack.i.h.bf16 %v2576_v39  ;;  %v2577_v27 = vunpack.i.l.bf16 %v2576_v39 }
 0x235   :  { %v2568_v13 = vunpack.i.h.bf16 %v2566_v15  ;;  %v2567_v56 = vunpack.i.l.bf16 %v2566_v15  ;;  %v2553_v15 = vunpack.i.h.bf16 %v3880_v23 }
 0x236   :  { %v1312_v39 = vsel %vm319_vm2, %v3768_v11, %v2578_v60 }
 0x237   :  { %v2581_v44 = vpop.permute.xlu0 %2580  ;;  %v1261_v17 = vsel %vm319_vm2, %v3702_v54, %v2568_v13  ;;  %v1260_v61 = vsel %vm319_vm2, %v3698_v7, %v2567_v56 }
 0x238   :  { %v2583_v62 = vunpack.i.h.bf16 %v2581_v44  ;;  %v2582_v52 = vunpack.i.l.bf16 %v2581_v44  ;;  %v2571_v49 = vpop.permute.xlu1 %2570 }
 0x239   :  { %v2573_v8 = vunpack.i.h.bf16 %v2571_v49  ;;  %v2572_v12 = vunpack.i.l.bf16 %v2571_v49 }
 0x23a   :  { %v1309_v40 = vsel %vm319_vm2, %v3720_v32, %v2582_v52  ;;  %v1310_v45 = vsel %vm319_vm2, %v3737_v22, %v2583_v62  ;;  %1598 = vmatmul.mubr.bf16.gmra.mrb[12].mxu1 %v1358_v47 }
 0x23b   :  { %v1276_v20 = vsel %vm393_vm4, %v1260_v61, %v2572_v12  ;;  %v1277_v57 = vsel %vm393_vm4, %v1261_v17, %v2573_v8  ;;  %v2586_v53 = vpop.permute.xlu0 %2585  ;;  %v1325_v32 = vsel %vm393_vm4, %v1309_v40, %v2557_v19  ;;  %v1326_v37 = vsel %vm393_vm4, %v1310_v45, %v2558_v35 }
 0x23c   :  { %v2588_v10 = vunpack.i.h.bf16 %v2586_v53  ;;  %v2587_v26 = vunpack.i.l.bf16 %v2586_v53  ;;  %v2591_v54 = vpop.permute.xlu1 %2590  ;;  %v1293_v14 = vsel %vm1284_vm7, %v1276_v20, %v2562_v0  ;;  %v1294_v7 = vsel %vm1284_vm7, %v1277_v57, %v2563_v43 }
 0x23d   :  { %v1361_v30 = vpack.c.bf16 %v1294_v7, %v1293_v14  ;;  %v2593_v55 = vunpack.i.h.bf16 %v2591_v54  ;;  %v2592_v31 = vunpack.i.l.bf16 %v2591_v54 }
 0x23e   :  { %v1341_v22 = vsel %vm1284_vm7, %v1325_v32, %v2587_v26  ;;  %v1342_v1 = vsel %vm1284_vm7, %v1326_v37, %v2588_v10 }
 0x23f   :  { %v2601_v24 = vpop.permute.xlu0 %2600  ;;  %v1362_v28 = vpack.c.bf16 %v1342_v1, %v1341_v22  ;;  %v1263_v9 = vsel %vm319_vm2, %v3544_v2, %v2593_v55  ;;  %v1262_v16 = vsel %vm319_vm2, %v3564_v33, %v2592_v31  ;;  %v1311_v2 = vsel %vm319_vm2, %v3742_v36, %v2577_v27 }
 0x240   :  { %v2596_v51 = vpop.permute.xlu1 %2595  ;;  %v2603_v50 = vunpack.i.h.bf16 %v2601_v24  ;;  %v2602_v48 = vunpack.i.l.bf16 %v2601_v24 }
 0x241   :  { %1605 = vmatprep.mubr.bf16.mxu1 %v1362_v28  ;;  %v2598_v29 = vunpack.i.h.bf16 %v2596_v51  ;;  %v2597_v6 = vunpack.i.l.bf16 %v2596_v51 }
 0x242   :  { %1606 = vmatmul.mubr.bf16.gmra.mrb[16].mxu1 %v1361_v30  ;;  %v1328_v44 = vsel %vm393_vm4, %v1312_v39, %v2603_v50  ;;  %v1327_v62 = vsel %vm393_vm4, %v1311_v2, %v2602_v48 }
 0x243   :  { %v2606_v42 = vpop.permute.xlu0 %2605  ;;  %v1278_v38 = vsel %vm393_vm4, %v1262_v16, %v2597_v6  ;;  %v1279_v34 = vsel %vm393_vm4, %v1263_v9, %v2598_v29 }
 0x244   :  { %v2611_v4 = vpop.permute.xlu1 %2610  ;;  %v1295_v52 = vsel %vm1284_vm7, %v1278_v38, %v2552_v59  ;;  %v1296_v47 = vsel %vm1284_vm7, %v1279_v34, %v2553_v15  ;;  %v2608_v14 = vunpack.i.h.bf16 %v2606_v42  ;;  %v2607_v7 = vunpack.i.l.bf16 %v2606_v42 }
 0x245   :  { %v1364_v8 = vpack.c.bf16 %v1296_v47, %v1295_v52  ;;  %v2613_v32 = vunpack.i.h.bf16 %v2611_v4  ;;  %v2612_v37 = vunpack.i.l.bf16 %v2611_v4 }
 0x247   :  { %v2616_v5 = vpop.permute.xlu0 %2615 }
 0x248   :  { %v2618_v13 = vunpack.i.h.bf16 %v2616_v5  ;;  %v2617_v56 = vunpack.i.l.bf16 %v2616_v5  ;;  %v2621_v33 = vpop.permute.xlu1 %2620 }
 0x249   :  { %v2623_v36 = vunpack.i.h.bf16 %v2621_v33  ;;  %v2622_v12 = vunpack.i.l.bf16 %v2621_v33 }
 0x24a   :  { %v1343_v23 = vsel %vm1284_vm7, %v1327_v62, %v2617_v56  ;;  %v1344_v49 = vsel %vm1284_vm7, %v1328_v44, %v2618_v13 }
 0x24b   :  { %v2631_v43 = vpop.permute.xlu0 %2630  ;;  %v1365_v11 = vpack.c.bf16 %v1344_v49, %v1343_v23  ;;  %v1265_v20 = vsel %vm319_vm2, %v3624_v41, %v2623_v36  ;;  %v1264_v57 = vsel %vm319_vm2, %v3605_v3, %v2622_v12 }
 0x24c   :  { %v2626_v0 = vpop.permute.xlu1 %2625  ;;  %v2632_v31 = vunpack.i.l.bf16 %v2631_v43 }
 0x24d   :  { %1613 = vmatprep.mubr.bf16.mxu1 %v1365_v11  ;;  %v2628_v17 = vunpack.i.h.bf16 %v2626_v0  ;;  %v2627_v61 = vunpack.i.l.bf16 %v2626_v0 }
 0x24e   :  { %1614 = vmatmul.mubr.bf16.gmra.mrb[20].mxu1 %v1364_v8  ;;  %v1315_v59 = vsel %vm319_vm2, %v3790_v21, %v2632_v31 }
 0x24f   :  { %v2636_v40 = vpop.permute.xlu0 %2635  ;;  %v1280_v53 = vsel %vm393_vm4, %v1264_v57, %v2627_v61  ;;  %v1281_v10 = vsel %vm393_vm4, %v1265_v20, %v2628_v17 }
 0x250   :  { %v2638_v45 = vunpack.i.h.bf16 %v2636_v40  ;;  %v2637_v35 = vunpack.i.l.bf16 %v2636_v40  ;;  %v2651_v19 = vpop.permute.xlu1 %2650  ;;  %v1297_v28 = vsel %vm1284_vm7, %v1280_v53, %v2612_v37  ;;  %v1298_v51 = vsel %vm1284_vm7, %v1281_v10, %v2613_v32  ;;  %v1893_v10 = vld [vmem:[%s4111_s7] sm:$0xff] }
 0x251   :  { %v2653_v29 = vunpack.i.h.bf16 %v2651_v19  ;;  %v2652_v6 = vunpack.i.l.bf16 %v2651_v19  ;;  %v1367_v16 = vpack.c.bf16 %v1298_v51, %v1297_v28  ;;  %2262 = vmatprep.mubr.f32.mxu0 %v1893_v10  ;;  %v3990_v32 = vld [vmem:[%s4109_s5] ss:$0 sm:$0xff] }
 0x252   :  { %v1313_v26 = vsel %vm319_vm2, %v3763_v58, %v2637_v35  ;;  %v1314_v54 = vsel %vm319_vm2, %v3784_v25, %v2638_v45  ;;  %v2633_v58 = vunpack.i.h.bf16 %v2631_v43 }
 0x253   :  { %v2641_v22 = vpop.permute.xlu0 %2640  ;;  %v1329_v3 = vsel %vm393_vm4, %v1313_v26, %v2607_v7  ;;  %v1330_v24 = vsel %vm393_vm4, %v1314_v54, %v2608_v14  ;;  %v1267_v5 = vsel %vm319_vm2, %v3637_v63, %v2653_v29  ;;  %v1266_v39 = vsel %vm319_vm2, %v3669_v18, %v2652_v6 }
 0x254   :  { %v2643_v1 = vunpack.i.h.bf16 %v2641_v22  ;;  %v2642_v41 = vunpack.i.l.bf16 %v2641_v22  ;;  %v2656_v30 = vpop.permute.xlu1 %2655  ;;  %v1316_v15 = vsel %vm319_vm2, %v3809_v46, %v2633_v58 }
 0x255   :  { %v2658_v27 = vunpack.i.h.bf16 %v2656_v30  ;;  %v2657_v4 = vunpack.i.l.bf16 %v2656_v30 }
 0x256   :  { %v1345_v55 = vsel %vm1284_vm7, %v1329_v3, %v2642_v41  ;;  %v1346_v25 = vsel %vm1284_vm7, %v1330_v24, %v2643_v1  ;;  %v3995_v41 = vld [vmem:[%s4110_s6] ss:$0 sm:$0xff] }
 0x257   :  { %v2646_v42 = vpop.permute.xlu0 %2645  ;;  %v1368_v60 = vpack.c.bf16 %v1346_v25, %v1345_v55  ;;  %v1282_v13 = vsel %vm393_vm4, %v1266_v39, %v2657_v4  ;;  %v1283_v56 = vsel %vm393_vm4, %v1267_v5, %v2658_v27 }
 0x258   :  { %v2666_v9 = vpop.permute.xlu1 %2665  ;;  %v2648_v50 = vunpack.i.h.bf16 %v2646_v42  ;;  %v2647_v48 = vunpack.i.l.bf16 %v2646_v42 }
 0x259   :  { %1621 = vmatprep.mubr.bf16.mxu1 %v1368_v60  ;;  %v2668_v38 = vunpack.i.h.bf16 %v2666_v9  ;;  %v2667_v34 = vunpack.i.l.bf16 %v2666_v9 }
 0x25a   :  { %1622 = vmatmul.mubr.bf16.gmra.mrb[24].mxu1 %v1367_v16  ;;  %v1332_v62 = vsel %vm393_vm4, %v1316_v15, %v2648_v50  ;;  %v1331_v46 = vsel %vm393_vm4, %v1315_v59, %v2647_v48 }
 0x25b   :  { %v2661_v2 = vpop.permute.xlu0 %2660  ;;  %v1299_v52 = vsel %vm1284_vm7, %v1282_v13, %v2667_v34  ;;  %v1300_v21 = vsel %vm1284_vm7, %v1283_v56, %v2668_v38 }
 0x25c   :  { %v2663_v33 = vunpack.i.h.bf16 %v2661_v2  ;;  %v2662_v44 = vunpack.i.l.bf16 %v2661_v2  ;;  %v1370_v23 = vpack.c.bf16 %v1300_v21, %v1299_v52 }
 0x25e   :  { %v1347_v63 = vsel %vm1284_vm7, %v1331_v46, %v2662_v44  ;;  %v1348_v47 = vsel %vm1284_vm7, %v1332_v62, %v2663_v33 }
 0x25f   :  { %v1371_v18 = vpack.c.bf16 %v1348_v47, %v1347_v63 }
 0x261   :  { %1629 = vmatprep.mubr.bf16.mxu1 %v1371_v18 }
 0x262   :  { %1630 = vmatmul.mubr.bf16.gmra.mrb[28].mxu1 %v1370_v23 }
 0x26f   :  { %v2216_v49 = vpop.f32.mrb[16].mxu0 }
 0x270   :  { %v1672_v43 = vpop.f32.mrb[17].mxu0 }
 0x271   :  { %v2217_v11 = vpop.f32.mrb[18].mxu0 }
 0x272   :  { %v1675_v0 = vpop.f32.mrb[19].mxu0 }
 0x277   :  { %v3964_v8 = vpop.f32.mrb[20].mxu0 }
 0x278   :  { %v1688_v36 = vpop.f32.mrb[21].mxu0 }
 0x279   :  { %v3966_v12 = vpop.f32.mrb[22].mxu0 }
 0x27a   :  { %v1691_v17 = vpop.f32.mrb[23].mxu0 }
 0x284   :  { %v3968_v61 = vpop.f32.mrb[24].mxu0 }
 0x285   :  { %v3970_v40 = vpop.f32.mrb[25].mxu0 }
 0x286   :  { %v3972_v45 = vpop.f32.mrb[26].mxu0 }
 0x287   :  { %v3974_v35 = vpop.f32.mrb[27].mxu0 }
 0x28c   :  { %v3976_v19 = vpop.f32.mrb[28].mxu0 }
 0x28d   :  { %v3978_v20 = vpop.f32.mrb[29].mxu0 }
 0x28e   :  { %v3980_v57 = vpop.f32.mrb[30].mxu0 }
 0x28f   :  { %v3982_v53 = vpop.f32.mrb[31].mxu0 }
 0x2e5   :  { %v2108_v26 = vpop.f32.mrb[0].mxu1 }
 0x2e6   :  { %v2109_v54 = vpop.f32.mrb[1].mxu1 }
 0x2e7   :  { %v2110_v14 = vadd.f32 %v2109_v54, %v2108_v26  ;;  %v2111_v7 = vpop.f32.mrb[2].mxu1 }
 0x2e8   :  { %v2112_v37 = vpop.f32.mrb[3].mxu1 }
 0x2e9   :  { %v1673_v22 = vadd.f32 %v2110_v14, %v1672_v43  ;;  %v2113_v1 = vadd.f32 %v2112_v37, %v2111_v7 }
 0x2eb   :  { %v1742_v30 = vmul.f32 %v3990_v32, %v1673_v22  ;;  %v1676_v3 = vadd.f32 %v2113_v1, %v1675_v0 }
 0x2ed   :  { %v1765_v24 = vadd.f32 %v3995_v41, %v1742_v30  ;;  %v1743_v28 = vmul.f32 %v3990_v32, %v1676_v3 }
 0x2ef   :  { %v2064_v51 = vmul.f32 -1.442695, %v1765_v24  ;;  %v1766_v58 = vadd.f32 %v3995_v41, %v1743_v28 }
 0x2f1   :  { %2755 = vpow2.f32 %v2064_v51  ;;  %v2065_v55 = vmul.f32 -1.442695, %v1766_v58 }
 0x2f3   :  { %2757 = vpow2.f32 %v2065_v55 }
 0x2f5   :  { %v2114_v25 = vpop.f32.mrb[4].mxu1 }
 0x2f6   :  { %v2115_v31 = vpop.f32.mrb[5].mxu1 }
 0x2f7   :  { %v2116_v29 = vadd.f32 %v2115_v31, %v2114_v25  ;;  %v2117_v6 = vpop.f32.mrb[6].mxu1 }
 0x2f8   :  { %v2118_v42 = vpop.f32.mrb[7].mxu1 }
 0x2f9   :  { %v1681_v60 = vadd.f32 %v2216_v49, %v2116_v29  ;;  %v2119_v27 = vadd.f32 %v2118_v42, %v2117_v6 }
 0x2fb   :  { %v2756_v4 = vpop.eup %2755  ;;  %v1744_v9 = vmul.f32 %v3990_v32, %v1681_v60  ;;  %v1684_v16 = vadd.f32 %v2217_v11, %v2119_v27 }
 0x2fc   :  { %v1829_v50 = vadd.f32 1.0, %v2756_v4 }
 0x2fd   :  { %v2758_v48 = vpop.eup %2757  ;;  %v4003_v38 = vadd.f32 %v3995_v41, %v1744_v9  ;;  %v1745_v34 = vmul.f32 %v3990_v32, %v1684_v16 }
 0x2fe   :  { %2759 = vrcp.f32 %v1829_v50  ;;  %v1830_v15 = vadd.f32 1.0, %v2758_v48 }
 0x2ff   :  { %v2066_v59 = vmul.f32 -1.442695, %v4003_v38  ;;  %v4008_v5 = vadd.f32 %v3995_v41, %v1745_v34 }
 0x300   :  { %2761 = vrcp.f32 %v1830_v15 }
 0x301   :  { %2763 = vpow2.f32 %v2066_v59  ;;  %v2067_v39 = vmul.f32 -1.442695, %v4008_v5 }
 0x303   :  { %2765 = vpow2.f32 %v2067_v39 }
 0x305   :  { %v2120_v2 = vpop.f32.mrb[8].mxu1 }
 0x306   :  { %v2121_v13 = vpop.f32.mrb[9].mxu1 }
 0x307   :  { %v2122_v56 = vadd.f32 %v2121_v13, %v2120_v2  ;;  %v2123_v33 = vpop.f32.mrb[10].mxu1 }
 0x308   :  { %v2760_v44 = vpop.eup %2759  ;;  %v2124_v62 = vpop.f32.mrb[11].mxu1 }
 0x309   :  { %v1689_v46 = vadd.f32 %v2122_v56, %v1688_v36  ;;  %v2125_v52 = vadd.f32 %v2124_v62, %v2123_v33  ;;  %v1877_v23 = vmul.f32 %v2760_v44, %v1765_v24 }
 0x30a   :  { %v2762_v21 = vpop.eup %2761 }
 0x30b   :  { %v2764_v63 = vpop.eup %2763  ;;  %v1746_v47 = vmul.f32 %v3990_v32, %v1689_v46  ;;  %v1692_v18 = vadd.f32 %v2125_v52, %v1691_v17  ;;  %v1878_v49 = vmul.f32 %v2762_v21, %v1766_v58 }
 0x30c   :  { %v1831_v43 = vadd.f32 1.0, %v2764_v63 }
 0x30d   :  { %v2766_v11 = vpop.eup %2765  ;;  %v4013_v0 = vadd.f32 %v3995_v41, %v1746_v47  ;;  %v1747_v10 = vmul.f32 %v3990_v32, %v1692_v18  ;;  %v2126_v26 = vpop.f32.mrb[12].mxu1  ;;  %v2268_v54 = vpack.c.bf16 %v1878_v49, %v1877_v23 }
 0x30e   :  { %2767 = vrcp.f32 %v1831_v43  ;;  %v1832_v14 = vadd.f32 1.0, %v2766_v11  ;;  %v2127_v36 = vpop.f32.mrb[13].mxu1 }
 0x30f   :  { %v2068_v7 = vmul.f32 -1.442695, %v4013_v0  ;;  %v4018_v37 = vadd.f32 %v3995_v41, %v1747_v10  ;;  %v2128_v17 = vadd.f32 %v2127_v36, %v2126_v26  ;;  %v2129_v22 = vpop.f32.mrb[14].mxu1  ;;  %2269 = vmatprep.subr.bf16.mxu0 %v2268_v54 }
 0x310   :  { %2769 = vrcp.f32 %v1832_v14  ;;  %v2130_v1 = vpop.f32.mrb[15].mxu1  ;;  %2271 = vmatpush3.bf16.msra.mxu0 %v2268_v54 }
 0x311   :  { %2771 = vpow2.f32 %v2068_v7  ;;  %v2069_v30 = vmul.f32 -1.442695, %v4018_v37  ;;  %v1697_v3 = vadd.f32 %v3964_v8, %v2128_v17  ;;  %v2131_v24 = vadd.f32 %v2130_v1, %v2129_v22 }
 0x313   :  { %2773 = vpow2.f32 %v2069_v30  ;;  %v1748_v28 = vmul.f32 %v3990_v32, %v1697_v3  ;;  %v1700_v51 = vadd.f32 %v3966_v12, %v2131_v24 }
 0x315   :  { %v4025_v58 = vadd.f32 %v3995_v41, %v1748_v28  ;;  %v1749_v55 = vmul.f32 %v3990_v32, %v1700_v51  ;;  %v2132_v25 = vpop.f32.mrb[16].mxu1 }
 0x316   :  { %v2133_v31 = vpop.f32.mrb[17].mxu1 }
 0x317   :  { %v2070_v29 = vmul.f32 -1.442695, %v4025_v58  ;;  %v4030_v6 = vadd.f32 %v3995_v41, %v1749_v55  ;;  %v2134_v42 = vadd.f32 %v2133_v31, %v2132_v25  ;;  %v2135_v8 = vpop.f32.mrb[18].mxu1 }
 0x318   :  { %v2768_v60 = vpop.eup %2767  ;;  %v2136_v27 = vpop.f32.mrb[19].mxu1 }
 0x319   :  { %2775 = vpow2.f32 %v2070_v29  ;;  %v2071_v4 = vmul.f32 -1.442695, %v4030_v6  ;;  %v1705_v12 = vadd.f32 %v2134_v42, %v3970_v40  ;;  %v2137_v9 = vadd.f32 %v2136_v27, %v2135_v8 }
 0x31a   :  { %v2770_v16 = vpop.eup %2769  ;;  %v1879_v50 = vmul.f32 %v2768_v60, %v4003_v38 }
 0x31b   :  { %v2772_v48 = vpop.eup %2771  ;;  %2777 = vpow2.f32 %v2071_v4  ;;  %v1750_v34 = vmul.f32 %v3990_v32, %v1705_v12  ;;  %v1708_v15 = vadd.f32 %v2137_v9, %v3974_v35  ;;  %v1880_v59 = vmul.f32 %v2770_v16, %v4008_v5 }
 0x31c   :  { %v1833_v39 = vadd.f32 1.0, %v2772_v48 }
 0x31d   :  { %v2774_v2 = vpop.eup %2773  ;;  %v4039_v13 = vadd.f32 %v3995_v41, %v1750_v34  ;;  %v1751_v56 = vmul.f32 %v3990_v32, %v1708_v15  ;;  %v2272_v40 = vpack.c.bf16 %v1880_v59, %v1879_v50 }
 0x31e   :  { %2779 = vrcp.f32 %v1833_v39  ;;  %v1834_v33 = vadd.f32 1.0, %v2774_v2 }
 0x31f   :  { %v2072_v38 = vmul.f32 -1.442695, %v4039_v13  ;;  %v4044_v44 = vadd.f32 %v3995_v41, %v1751_v56  ;;  %2273 = vmatprep.subr.bf16.mxu0 %v2272_v40 }
 0x320   :  { %2781 = vrcp.f32 %v1834_v33  ;;  %2275 = vmatpush3.bf16.msra.mxu0 %v2272_v40 }
 0x321   :  { %2783 = vpow2.f32 %v2072_v38  ;;  %v2073_v35 = vmul.f32 -1.442695, %v4044_v44  ;;  %v2138_v5 = vpop.f32.mrb[20].mxu1 }
 0x322   :  { %v2139_v62 = vpop.f32.mrb[21].mxu1 }
 0x323   :  { %v2776_v46 = vpop.eup %2775  ;;  %2785 = vpow2.f32 %v2073_v35  ;;  %v2140_v52 = vadd.f32 %v2139_v62, %v2138_v5  ;;  %v2141_v21 = vpop.f32.mrb[22].mxu1 }
 0x324   :  { %v1835_v63 = vadd.f32 1.0, %v2776_v46  ;;  %v2142_v47 = vpop.f32.mrb[23].mxu1 }
 0x325   :  { %v2778_v18 = vpop.eup %2777  ;;  %v1713_v23 = vadd.f32 %v3968_v61, %v2140_v52  ;;  %v2143_v49 = vadd.f32 %v2142_v47, %v2141_v21 }
 0x326   :  { %2787 = vrcp.f32 %v1835_v63  ;;  %v1836_v43 = vadd.f32 1.0, %v2778_v18 }
 0x327   :  { %v1752_v11 = vmul.f32 %v3990_v32, %v1713_v23  ;;  %v1716_v10 = vadd.f32 %v3972_v45, %v2143_v49 }
 0x328   :  { %v2780_v26 = vpop.eup %2779  ;;  %2789 = vrcp.f32 %v1836_v43 }
 0x329   :  { %v4051_v54 = vadd.f32 %v3995_v41, %v1752_v11  ;;  %v1753_v14 = vmul.f32 %v3990_v32, %v1716_v10  ;;  %v1881_v22 = vmul.f32 %v2780_v26, %v4013_v0 }
 0x32a   :  { %v2782_v36 = vpop.eup %2781 }
 0x32b   :  { %v2784_v7 = vpop.eup %2783  ;;  %v2074_v17 = vmul.f32 -1.442695, %v4051_v54  ;;  %v4056_v61 = vadd.f32 %v3995_v41, %v1753_v14  ;;  %v1882_v1 = vmul.f32 %v2782_v36, %v4018_v37 }
 0x32c   :  { %v1837_v30 = vadd.f32 1.0, %v2784_v7 }
 0x32d   :  { %v2786_v45 = vpop.eup %2785  ;;  %2791 = vpow2.f32 %v2074_v17  ;;  %v2075_v3 = vmul.f32 -1.442695, %v4056_v61  ;;  %v2144_v24 = vpop.f32.mrb[24].mxu1  ;;  %v2276_v28 = vpack.c.bf16 %v1882_v1, %v1881_v22 }
 0x32e   :  { %2793 = vrcp.f32 %v1837_v30  ;;  %v1838_v51 = vadd.f32 1.0, %v2786_v45  ;;  %v2145_v55 = vpop.f32.mrb[25].mxu1 }
 0x32f   :  { %2795 = vpow2.f32 %v2075_v3  ;;  %v2146_v25 = vadd.f32 %v2145_v55, %v2144_v24  ;;  %v2147_v31 = vpop.f32.mrb[26].mxu1  ;;  %2277 = vmatprep.subr.bf16.mxu0 %v2276_v28  ;;  %v1894_v55 = vld [vmem:[%s4111_s7 + $0x8] sm:$0xff] }
 0x330   :  { %v2788_v29 = vpop.eup %2787  ;;  %2797 = vrcp.f32 %v1838_v51  ;;  %v2148_v42 = vpop.f32.mrb[27].mxu1  ;;  %2279 = vmatpush3.bf16.msra.mxu0 %v2276_v28 }
 0x331   :  { %v1721_v0 = vadd.f32 %v2146_v25, %v3978_v20  ;;  %v2149_v37 = vadd.f32 %v2148_v42, %v2147_v31  ;;  %v1883_v4 = vmul.f32 %v2788_v29, %v4025_v58  ;;  %v1895_v25 = vld [vmem:[%s4111_s7 + $0x10] sm:$0xff]  ;;  %v1896_v31 = vld [vmem:[%s4111_s7 + $0x18] sm:$0xff]  ;;  %s2819_s7 = scalar_lea.vmem %s1996_s16, 512 }
 0x332   :  { %v2790_v8 = vpop.eup %2789  ;;  %p2820_p0 = scmp.ne.s32.totalorder %s1996_s16, %s2819_s7  ;;  %p2825_p2 = scmp.lt.s32.totalorder %s2819_s7, %s2819_s7 }
 0x333   :  { %v1754_v60 = vmul.f32 %v3990_v32, %v1721_v0  ;;  %v1724_v27 = vadd.f32 %v2149_v37, %v3982_v53  ;;  %v1884_v12 = vmul.f32 %v2790_v8, %v4030_v6 }
 0x334   :  { %p2826_p3 = por %p2825_p2, %p2824_p1 }
 0x335   :  { %v1777_v9 = vadd.f32 %v3995_v41, %v1754_v60  ;;  %v1755_v16 = vmul.f32 %v3990_v32, %v1724_v27  ;;  %v2150_v50 = vpop.f32.mrb[28].mxu1  ;;  %v2280_v48 = vpack.c.bf16 %v1884_v12, %v1883_v4 }
 0x336   :  { %v2151_v34 = vpop.f32.mrb[29].mxu1  ;;  %p2827_p4 = pnand %p2826_p3, %p2820_p0 }
 0x337   :  { %v2792_v15 = vpop.eup %2791  ;;  %v2076_v59 = vmul.f32 -1.442695, %v1777_v9  ;;  %v1778_v20 = vadd.f32 %v3995_v41, %v1755_v16  ;;  %v2152_v39 = vadd.f32 %v2151_v34, %v2150_v50  ;;  %v2153_v2 = vpop.f32.mrb[30].mxu1  ;;  %2281 = vmatprep.subr.bf16.mxu0 %v2280_v48 }
 0x338   :  { %v2794_v56 = vpop.eup %2793  ;;  %v1839_v53 = vadd.f32 1.0, %v2792_v15  ;;  %v2154_v40 = vpop.f32.mrb[31].mxu1  ;;  %2283 = vmatpush3.bf16.msra.mxu0 %v2280_v48 }
 0x339   :  { %v2796_v58 = vpop.eup %2795  ;;  %2799 = vpow2.f32 %v2076_v59  ;;  %v2077_v6 = vmul.f32 -1.442695, %v1778_v20  ;;  %v1729_v33 = vadd.f32 %v3976_v19, %v2152_v39  ;;  %v2155_v38 = vadd.f32 %v2154_v40, %v2153_v2 }
 0x33a   :  { %v2798_v35 = vpop.eup %2797  ;;  %2801 = vrcp.f32 %v1839_v53  ;;  %v1840_v5 = vadd.f32 1.0, %v2796_v58  ;;  %v1885_v62 = vmul.f32 %v2794_v56, %v4039_v13 }
 0x33b   :  { %2803 = vpow2.f32 %v2077_v6  ;;  %v1756_v46 = vmul.f32 %v3990_v32, %v1729_v33  ;;  %v1732_v52 = vadd.f32 %v3980_v57, %v2155_v38  ;;  %v1886_v21 = vmul.f32 %v2798_v35, %v4044_v44 }
 0x33c   :  { %2805 = vrcp.f32 %v1840_v5 }
 0x33d   :  { %v1779_v63 = vadd.f32 %v3995_v41, %v1756_v46  ;;  %v1757_v47 = vmul.f32 %v3990_v32, %v1732_v52  ;;  %v2284_v18 = vpack.c.bf16 %v1886_v21, %v1885_v62 }
 0x33f   :  { %v2078_v19 = vmul.f32 -1.442695, %v1779_v63  ;;  %v1780_v23 = vadd.f32 %v3995_v41, %v1757_v47  ;;  %2285 = vmatprep.subr.bf16.mxu0 %v2284_v18 }
 0x340   :  { %2287 = vmatpush3.bf16.msra.mxu0 %v2284_v18 }
 0x341   :  { %2807 = vpow2.f32 %v2078_v19  ;;  %v2079_v13 = vmul.f32 -1.442695, %v1780_v23 }
 0x343   :  { %v2800_v49 = vpop.eup %2799  ;;  %2809 = vpow2.f32 %v2079_v13 }
 0x344   :  { %v2802_v43 = vpop.eup %2801  ;;  %v1841_v11 = vadd.f32 1.0, %v2800_v49 }
 0x345   :  { %v2804_v57 = vpop.eup %2803  ;;  %v1887_v26 = vmul.f32 %v2802_v43, %v4051_v54 }
 0x346   :  { %v2806_v10 = vpop.eup %2805  ;;  %2811 = vrcp.f32 %v1841_v11  ;;  %v1842_v44 = vadd.f32 1.0, %v2804_v57 }
 0x347   :  { %v1888_v32 = vmul.f32 %v2806_v10, %v4056_v61 }
 0x348   :  { %2813 = vrcp.f32 %v1842_v44 }
 0x349   :  { %v2288_v14 = vpack.c.bf16 %v1888_v32, %v1887_v26 }
 0x34b   :  { %v2808_v36 = vpop.eup %2807  ;;  %2289 = vmatprep.subr.bf16.mxu0 %v2288_v14 }
 0x34c   :  { %v1843_v41 = vadd.f32 1.0, %v2808_v36  ;;  %2291 = vmatpush3.bf16.msra.mxu0 %v2288_v14 }
 0x34d   :  { %v2810_v7 = vpop.eup %2809 }
 0x34e   :  { %2815 = vrcp.f32 %v1843_v41  ;;  %v1844_v17 = vadd.f32 1.0, %v2810_v7 }
 0x350   :  { %v2812_v22 = vpop.eup %2811  ;;  %2817 = vrcp.f32 %v1844_v17 }
 0x351   :  { %v1889_v30 = vmul.f32 %v2812_v22, %v1777_v9 }
 0x352   :  { %v2814_v1 = vpop.eup %2813 }
 0x353   :  { %v1890_v45 = vmul.f32 %v2814_v1, %v1778_v20 }
 0x355   :  { %v2292_v3 = vpack.c.bf16 %v1890_v45, %v1889_v30 }
 0x357   :  { %2293 = vmatprep.subr.bf16.mxu0 %v2292_v3 }
 0x358   :  { %v2816_v24 = vpop.eup %2815  ;;  %2295 = vmatpush3.bf16.msra.mxu0 %v2292_v3 }
 0x359   :  { %v1891_v61 = vmul.f32 %v2816_v24, %v1779_v63 }
 0x35a   :  { %v2818_v54 = vpop.eup %2817 }
 0x35b   :  { %v1892_v28 = vmul.f32 %v2818_v54, %v1780_v23 }
 0x35d   :  { %v2296_v51 = vpack.c.bf16 %v1892_v28, %v1891_v61 }
 0x35f   :  { %2297 = vmatprep.subr.bf16.mxu0 %v2296_v51 }
 0x360   :  { %2299 = vmatpush3.bf16.msra.mxu0 %v2296_v51 }
 0x363   :  { %2263 = vmatmul.mubr.f32.vlgmr.msra.gmra.mrb[32].mxu0 %v1894_v55 }
 0x364   :  { %2265 = vmatprep.mubr.f32.mxu0 %v1895_v25 }
 0x367   :  { %2266 = vmatmul.mubr.f32.gmra.mrb[34].mxu0 %v1896_v31 }
 0x436   :  { %v2264_v29 = vpop.f32.mrb[32].mxu0 }
 0x437   :  { %v1983_v42 = vmul.f32 0.11111111, %v2264_v29  ;;  %v1963_v0 = vpop.f32.mrb[33].mxu0 }
 0x438   :  { %v1982_v37 = vmul.f32 0.11111111, %v1963_v0 }
 0x439   :  { %1987 = vst.msk [vmem:[#allocation3 + $0x8] sm:$0xff] %vm319_vm2, %v1983_v42 }
 0x43a   :  { %1986 = vst.msk [vmem:[#allocation3] sm:$0xff] %vm319_vm2, %v1982_v37  ;;  %v2267_v8 = vpop.f32.mrb[34].mxu0 }
 0x43b   :  { %v1985_v60 = vmul.f32 0.11111111, %v2267_v8  ;;  %v1973_v27 = vpop.f32.mrb[35].mxu0 }
 0x43c   :  { %v1984_v4 = vmul.f32 0.11111111, %v1973_v27 }
 0x43d   :  { %1989 = vst.msk [vmem:[#allocation3 + $0x18] sm:$0xff] %vm319_vm2, %v1985_v60 }
 0x43e   :  { %1988 = vst.msk [vmem:[#allocation3 + $0x10] sm:$0xff] %vm319_vm2, %v1984_v4 }
 0x43f   :  { %2830 = shalt.err (!%p2827_p4)
}
 0x440   :  { %s2831_s29 = scalar_lea.hbm %s4112_s8, 512 }
 0x441   :  { %p2832_p5 = scmp.ne.s32.totalorder %s4112_s8, %s2831_s29  ;;  %p2835_p6 = scmp.lt.u32.totalorder %s2831_s29, %s4112_s8 }
 0x443   :  { %p2837_p7 = pnand %p2835_p6, %p2832_p5 }
 0x445   :  { %2840 = shalt.err (!%p2837_p7)
}
 0x446   :  { %s2850_s4 = smov 128   ;;  %s2851_s11 = smov 8  }
 0x447   :  { %2001 = dma.vmem_to_hbm [thread:$0]  %s1996_s16, 512, %s4112_s8, [#allocation4], %s2850_s4, %s2850_s4, %s2851_s11  }
 0x448   :  { %2841 = dma.done.wait [#allocation4], 512  }
 0x449   :  { %2842 = vsyncadd [#allocation4], 4294966784 }
 0x44a   :  { %2005 = vsyncpa [#allocation4], 1 }

</bundles_post_ra>
